<compile_context>
chip_gen: v5e
topology: v5e:2x2
jax: 0.10.0
libtpu: 0.0.40
codegen_flags: <defaults>
</compile_context>

<pallas_src>
import math
import jax
import jax.numpy as jnp
from jax.experimental import pallas as pl
from jax.experimental.pallas import tpu as pltpu

# ----- small hyper-parameters consistent with the module (512/256/3 scaled down) -----
VOCAB_SIZE  = 50
EMBED_DIM   = 32     # embedding_dim
HIDDEN_DIM  = 32     # hidden_dim
OUTPUT_SIZE = 3      # output_size
N_LAYERS    = 1
BATCH       = 2
SEQ_LEN     = 8


# --------------------------- Pallas kernel (hot path) ---------------------------------
def _bilstm_fc_kernel(embeds_ref, h0_ref, c0_ref, w_ih_ref, w_hh_ref, b_ref,
                      fc_w_ref, fc_b_ref, out_ref):
    # embeds_ref : (T, Bp, E)   time-major, batch padded to a sublane multiple
    # h0_ref/c0_ref : (2*Bp, H) rows [0:Bp]=forward init, [Bp:2Bp]=reverse init
    # w_ih_ref : (E, 8H)  lanes = [fwd i|f|g|o (4H) | rev i|f|g|o (4H)]
    # w_hh_ref : (H, 8H)  same lane layout
    # b_ref    : (1, 8H)  b_ih + b_hh, same lane layout
    # fc_w_ref : (2H, O), fc_b_ref : (1, O), out_ref : (Bp, O)
    T, Bp, E = embeds_ref.shape
    H4 = w_ih_ref.shape[1] // 2
    H = H4 // 4

    w_ih = w_ih_ref[...]
    w_hh = w_hh_ref[...]

    # ---- hoisted input projection for all timesteps & both directions, bias folded --
    x_all = embeds_ref[...].reshape(T * Bp, E)                       # (T*Bp, E)
    ig = (jnp.dot(x_all, w_ih, preferred_element_type=jnp.float32)
          + b_ref[...]).reshape(T, Bp, 2 * H4)                       # (T, Bp, 8H)

    # Pre-stack the per-step input gates (off the serial chain):
    #   rows [0:Bp]   forward direction consumes timestep t      -> lanes [0:4H]
    #   rows [Bp:2Bp] reverse direction consumes timestep T-1-t  -> lanes [4H:8H]
    ig_seq = [jnp.concatenate([ig[t, :, :H4], ig[T - 1 - t, :, H4:]], axis=0)
              for t in range(T)]                                     # T x (2Bp, 4H)

    # ---- fused fwd+rev recurrence, fully unrolled over static T ----
    h = h0_ref[...]                                                  # (2Bp, H)
    c = c0_ref[...]                                                  # (2Bp, H)
    for t in range(T):
        # single MXU push covering both directions' recurrent projection
        hg = jnp.dot(h, w_hh, preferred_element_type=jnp.float32)    # (2Bp, 8H)
        # block-diagonal slices (tile-aligned: Bp=8 sublanes, 4H=128 lanes)
        gates = jnp.concatenate([hg[:Bp, :H4], hg[Bp:, H4:]], axis=0) + ig_seq[t]
        # full-width activations: one sigmoid + one tanh over the whole (2Bp, 4H)
        sg = jax.nn.sigmoid(gates)
        tg = jnp.tanh(gates)
        i_g = sg[:, 0 * H:1 * H]
        f_g = sg[:, 1 * H:2 * H]
        o_g = sg[:, 3 * H:4 * H]
        g_g = tg[:, 2 * H:3 * H]
        c = f_g * c + i_g * g_g
        h = o_g * jnp.tanh(c)

    # ---- final fc + sigmoid on [h_fwd_final | h_rev_final] ----
    hcat = jnp.concatenate([h[:Bp, :], h[Bp:, :]], axis=1)           # (Bp, 2H)
    logits = (jnp.dot(hcat, fc_w_ref[...], preferred_element_type=jnp.float32)
              + fc_b_ref[...])
    out_ref[...] = jax.nn.sigmoid(logits)


# ------------------------------------ wrapper ------------------------------------------
def sentiment_rnn_forward(x_tokens, hidden, params):
    h0, c0 = hidden                                            # each (2, B, H)
    B, T = x_tokens.shape
    H = h0.shape[-1]
    Bp = ((B + 7) // 8) * 8                                    # pad batch to sublane group

    # gather directly in time-major (T, B, E) layout, pad batch with zeros
    emb_tbe = jnp.take(params["embedding"], x_tokens.T, axis=0)       # (T, B, E)
    embeds = jnp.pad(emb_tbe, ((0, 0), (0, Bp - B), (0, 0))).astype(jnp.float32)

    # both directions concatenated along lanes; PyTorch gate order [i|f|g|o] preserved
    w_ih = jnp.concatenate([params["w_ih"][0].T, params["w_ih"][1].T], axis=1)  # (E, 8H)
    w_hh = jnp.concatenate([params["w_hh"][0].T, params["w_hh"][1].T], axis=1)  # (H, 8H)
    b = jnp.concatenate([params["b_ih"][0] + params["b_hh"][0],
                         params["b_ih"][1] + params["b_hh"][1]], axis=0)[None, :]  # (1, 8H)

    def _stack_pad(a):   # (2, B, H) -> (2*Bp, H): rows [0:Bp]=fwd, [Bp:2Bp]=rev
        return jnp.concatenate([jnp.pad(a[0], ((0, Bp - B), (0, 0))),
                                jnp.pad(a[1], ((0, Bp - B), (0, 0)))], axis=0)
    h0p = _stack_pad(h0).astype(jnp.float32)
    c0p = _stack_pad(c0).astype(jnp.float32)

    fc_w = params["fc_w"].T                                    # (2H, O)
    fc_b = params["fc_b"][None, :]                             # (1, O)

    args = (embeds, h0p, c0p, w_ih, w_hh, b, fc_w, fc_b)
    vmem = pl.BlockSpec(memory_space=pltpu.MemorySpace.VMEM)

    out_p = pl.pallas_call(
        _bilstm_fc_kernel,
        out_shape=jax.ShapeDtypeStruct((Bp, fc_w.shape[1]), jnp.float32),
        in_specs=[vmem] * len(args),
        out_specs=vmem,
    )(*args)

    # NOTE: self.dropout (nn.Dropout) is identity at inference, so it is omitted.
    # TODO(synk): the PyTorch forward feeds hn.view(-1, H) into fc(2H -> O), which is a
    # shape bug for bidirectional=True; here fc consumes the per-batch concat of both
    # directions' final hidden states (the intended semantics), giving (B, output_size).
    # TODO(synk): on v7x the two directions could instead be split across the 2
    # TensorCores (grid=(2,), dimension_semantics=("parallel",)); at these toy sizes
    # the fused single-core chain is the better default.
    return out_p[:B], hidden


# ---------------------------- pure-JAX reference check ---------------------------------
def _ref_forward(x_tokens, hidden, params):
    h0, c0 = hidden
    emb = jnp.take(params["embedding"], x_tokens, axis=0)      # (B, T, E)
    finals = []
    for d in range(2):
        w_ih, w_hh = params["w_ih"][d], params["w_hh"][d]
        b = params["b_ih"][d] + params["b_hh"][d]
        seq = emb if d == 0 else emb[:, ::-1, :]
        xs = jnp.swapaxes(seq, 0, 1)                           # (T, B, E)

        def step(carry, x_t):
            h, c = carry
            gates = x_t @ w_ih.T + h @ w_hh.T + b
            i, f, g, o = jnp.split(gates, 4, axis=-1)
            i, f, o = jax.nn.sigmoid(i), jax.nn.sigmoid(f), jax.nn.sigmoid(o)
            g = jnp.tanh(g)
            c = f * c + i * g
            h = o * jnp.tanh(c)
            return (h, c), None

        (h_fin, _), _ = jax.lax.scan(step, (h0[d], c0[d]), xs)
        finals.append(h_fin)
    hcat = jnp.concatenate(finals, axis=-1)
    return jax.nn.sigmoid(hcat @ params["fc_w"].T + params["fc_b"])


# ---------------------------------------- main ------------------------------------------
def _init_params(key):
    ks = jax.random.split(key, 8)
    std = 1.0 / math.sqrt(HIDDEN_DIM)
    std_fc = 1.0 / math.sqrt(2 * HIDDEN_DIM)
    return {
        "embedding": jax.random.normal(ks[0], (VOCAB_SIZE, EMBED_DIM), jnp.float32),
        "w_ih": jax.random.uniform(ks[1], (2, 4 * HIDDEN_DIM, EMBED_DIM), jnp.float32, -std, std),
        "w_hh": jax.random.uniform(ks[2], (2, 4 * HIDDEN_DIM, HIDDEN_DIM), jnp.float32, -std, std),
        "b_ih": jax.random.uniform(ks[3], (2, 4 * HIDDEN_DIM), jnp.float32, -std, std),
        "b_hh": jax.random.uniform(ks[4], (2, 4 * HIDDEN_DIM), jnp.float32, -std, std),
        "fc_w": jax.random.uniform(ks[5], (OUTPUT_SIZE, 2 * HIDDEN_DIM), jnp.float32, -std_fc, std_fc),
        "fc_b": jax.random.uniform(ks[6], (OUTPUT_SIZE,), jnp.float32, -std_fc, std_fc),
    }


if __name__ == "__main__":
    key = jax.random.PRNGKey(0)
    pkey, xkey = jax.random.split(key)
    params = _init_params(pkey)

    x = jax.random.randint(xkey, (BATCH, SEQ_LEN), 0, VOCAB_SIZE, dtype=jnp.int32)
    # init_hidden: zeros of shape (n_layers * num_directions, B, H)
    hidden = (jnp.zeros((2 * N_LAYERS, BATCH, HIDDEN_DIM), jnp.float32),
              jnp.zeros((2 * N_LAYERS, BATCH, HIDDEN_DIM), jnp.float32))

    sig_out, hidden_out = sentiment_rnn_forward(x, hidden, params)
    sig_out = jax.block_until_ready(sig_out)

    ref = _ref_forward(x, hidden, params)
    assert sig_out.shape == (BATCH, OUTPUT_SIZE), sig_out.shape
    assert jnp.allclose(sig_out, ref, atol=1e-5, rtol=1e-5), (sig_out, ref)
    print("KERNEL_OK")
</pallas_src>

<mosaic_0001>
module attributes {stable_mosaic.version = 11 : i64} {
  func.func @_bilstm_fc_kernel(%arg0: memref<8x8x32xf32, #tpu.memory_space<vmem>>, %arg1: memref<16x32xf32, #tpu.memory_space<vmem>>, %arg2: memref<16x32xf32, #tpu.memory_space<vmem>>, %arg3: memref<32x256xf32, #tpu.memory_space<vmem>>, %arg4: memref<32x256xf32, #tpu.memory_space<vmem>>, %arg5: memref<1x256xf32, #tpu.memory_space<vmem>>, %arg6: memref<64x3xf32, #tpu.memory_space<vmem>>, %arg7: memref<1x3xf32, #tpu.memory_space<vmem>>, %arg8: memref<8x3xf32, #tpu.memory_space<vmem>>) attributes {dimension_semantics = [], scalar_prefetch = 0 : i64, scratch_operands = 0 : i64, tpu.core_type = #tpu.core_type<tc>} {
    %c0 = arith.constant 0 : index
    %c0_0 = arith.constant 0 : index
    %0 = vector.load %arg3[%c0, %c0_0] : memref<32x256xf32, #tpu.memory_space<vmem>>, vector<32x256xf32>
    %c0_1 = arith.constant 0 : index
    %c0_2 = arith.constant 0 : index
    %1 = vector.load %arg4[%c0_1, %c0_2] : memref<32x256xf32, #tpu.memory_space<vmem>>, vector<32x256xf32>
    %c0_3 = arith.constant 0 : index
    %c0_4 = arith.constant 0 : index
    %c0_5 = arith.constant 0 : index
    %2 = vector.load %arg0[%c0_3, %c0_4, %c0_5] : memref<8x8x32xf32, #tpu.memory_space<vmem>>, vector<8x8x32xf32>
    %3 = vector.shape_cast %2 : vector<8x8x32xf32> to vector<64x32xf32>
    %cst = arith.constant dense<0.000000e+00> : vector<64x256xf32>
    %4 = tpu.matmul %3, %0, %cst {dimension_numbers = #tpu.dot_dimension_numbers<[1], [0], [0], [1], [0, 0, 1, 1], [], []>} : vector<64x32xf32>, vector<32x256xf32>, vector<64x256xf32> -> vector<64x256xf32>
    %c0_6 = arith.constant 0 : index
    %c0_7 = arith.constant 0 : index
    %5 = vector.load %arg5[%c0_6, %c0_7] : memref<1x256xf32, #tpu.memory_space<vmem>>, vector<1x256xf32>
    %6 = vector.broadcast %5 : vector<1x256xf32> to vector<64x256xf32>
    %7 = arith.addf %4, %6 : vector<64x256xf32>
    %8 = vector.shape_cast %7 : vector<64x256xf32> to vector<8x8x256xf32>
    %9 = vector.extract_strided_slice %8 {offsets = [0, 0, 0], sizes = [1, 8, 128], strides = [1, 1, 1]} : vector<8x8x256xf32> to vector<1x8x128xf32>
    %10 = vector.shape_cast %9 : vector<1x8x128xf32> to vector<8x128xf32>
    %11 = vector.extract_strided_slice %8 {offsets = [7, 0, 128], sizes = [1, 8, 128], strides = [1, 1, 1]} : vector<8x8x256xf32> to vector<1x8x128xf32>
    %12 = vector.shape_cast %11 : vector<1x8x128xf32> to vector<8x128xf32>
    %13 = tpu.concatenate %10, %12 in 0 : vector<8x128xf32>, vector<8x128xf32> -> vector<16x128xf32>
    %14 = vector.extract_strided_slice %8 {offsets = [1, 0, 0], sizes = [1, 8, 128], strides = [1, 1, 1]} : vector<8x8x256xf32> to vector<1x8x128xf32>
    %15 = vector.shape_cast %14 : vector<1x8x128xf32> to vector<8x128xf32>
    %16 = vector.extract_strided_slice %8 {offsets = [6, 0, 128], sizes = [1, 8, 128], strides = [1, 1, 1]} : vector<8x8x256xf32> to vector<1x8x128xf32>
    %17 = vector.shape_cast %16 : vector<1x8x128xf32> to vector<8x128xf32>
    %18 = tpu.concatenate %15, %17 in 0 : vector<8x128xf32>, vector<8x128xf32> -> vector<16x128xf32>
    %19 = vector.extract_strided_slice %8 {offsets = [2, 0, 0], sizes = [1, 8, 128], strides = [1, 1, 1]} : vector<8x8x256xf32> to vector<1x8x128xf32>
    %20 = vector.shape_cast %19 : vector<1x8x128xf32> to vector<8x128xf32>
    %21 = vector.extract_strided_slice %8 {offsets = [5, 0, 128], sizes = [1, 8, 128], strides = [1, 1, 1]} : vector<8x8x256xf32> to vector<1x8x128xf32>
    %22 = vector.shape_cast %21 : vector<1x8x128xf32> to vector<8x128xf32>
    %23 = tpu.concatenate %20, %22 in 0 : vector<8x128xf32>, vector<8x128xf32> -> vector<16x128xf32>
    %24 = vector.extract_strided_slice %8 {offsets = [3, 0, 0], sizes = [1, 8, 128], strides = [1, 1, 1]} : vector<8x8x256xf32> to vector<1x8x128xf32>
    %25 = vector.shape_cast %24 : vector<1x8x128xf32> to vector<8x128xf32>
    %26 = vector.extract_strided_slice %8 {offsets = [4, 0, 128], sizes = [1, 8, 128], strides = [1, 1, 1]} : vector<8x8x256xf32> to vector<1x8x128xf32>
    %27 = vector.shape_cast %26 : vector<1x8x128xf32> to vector<8x128xf32>
    %28 = tpu.concatenate %25, %27 in 0 : vector<8x128xf32>, vector<8x128xf32> -> vector<16x128xf32>
    %29 = vector.extract_strided_slice %8 {offsets = [4, 0, 0], sizes = [1, 8, 128], strides = [1, 1, 1]} : vector<8x8x256xf32> to vector<1x8x128xf32>
    %30 = vector.shape_cast %29 : vector<1x8x128xf32> to vector<8x128xf32>
    %31 = vector.extract_strided_slice %8 {offsets = [3, 0, 128], sizes = [1, 8, 128], strides = [1, 1, 1]} : vector<8x8x256xf32> to vector<1x8x128xf32>
    %32 = vector.shape_cast %31 : vector<1x8x128xf32> to vector<8x128xf32>
    %33 = tpu.concatenate %30, %32 in 0 : vector<8x128xf32>, vector<8x128xf32> -> vector<16x128xf32>
    %34 = vector.extract_strided_slice %8 {offsets = [5, 0, 0], sizes = [1, 8, 128], strides = [1, 1, 1]} : vector<8x8x256xf32> to vector<1x8x128xf32>
    %35 = vector.shape_cast %34 : vector<1x8x128xf32> to vector<8x128xf32>
    %36 = vector.extract_strided_slice %8 {offsets = [2, 0, 128], sizes = [1, 8, 128], strides = [1, 1, 1]} : vector<8x8x256xf32> to vector<1x8x128xf32>
    %37 = vector.shape_cast %36 : vector<1x8x128xf32> to vector<8x128xf32>
    %38 = tpu.concatenate %35, %37 in 0 : vector<8x128xf32>, vector<8x128xf32> -> vector<16x128xf32>
    %39 = vector.extract_strided_slice %8 {offsets = [6, 0, 0], sizes = [1, 8, 128], strides = [1, 1, 1]} : vector<8x8x256xf32> to vector<1x8x128xf32>
    %40 = vector.shape_cast %39 : vector<1x8x128xf32> to vector<8x128xf32>
    %41 = vector.extract_strided_slice %8 {offsets = [1, 0, 128], sizes = [1, 8, 128], strides = [1, 1, 1]} : vector<8x8x256xf32> to vector<1x8x128xf32>
    %42 = vector.shape_cast %41 : vector<1x8x128xf32> to vector<8x128xf32>
    %43 = tpu.concatenate %40, %42 in 0 : vector<8x128xf32>, vector<8x128xf32> -> vector<16x128xf32>
    %44 = vector.extract_strided_slice %8 {offsets = [7, 0, 0], sizes = [1, 8, 128], strides = [1, 1, 1]} : vector<8x8x256xf32> to vector<1x8x128xf32>
    %45 = vector.shape_cast %44 : vector<1x8x128xf32> to vector<8x128xf32>
    %46 = vector.extract_strided_slice %8 {offsets = [0, 0, 128], sizes = [1, 8, 128], strides = [1, 1, 1]} : vector<8x8x256xf32> to vector<1x8x128xf32>
    %47 = vector.shape_cast %46 : vector<1x8x128xf32> to vector<8x128xf32>
    %48 = tpu.concatenate %45, %47 in 0 : vector<8x128xf32>, vector<8x128xf32> -> vector<16x128xf32>
    %c0_8 = arith.constant 0 : index
    %c0_9 = arith.constant 0 : index
    %49 = vector.load %arg1[%c0_8, %c0_9] : memref<16x32xf32, #tpu.memory_space<vmem>>, vector<16x32xf32>
    %c0_10 = arith.constant 0 : index
    %c0_11 = arith.constant 0 : index
    %50 = vector.load %arg2[%c0_10, %c0_11] : memref<16x32xf32, #tpu.memory_space<vmem>>, vector<16x32xf32>
    %cst_12 = arith.constant dense<0.000000e+00> : vector<16x256xf32>
    %51 = tpu.matmul %49, %1, %cst_12 {dimension_numbers = #tpu.dot_dimension_numbers<[1], [0], [0], [1], [0, 0, 1, 1], [], []>} : vector<16x32xf32>, vector<32x256xf32>, vector<16x256xf32> -> vector<16x256xf32>
    %52 = vector.extract_strided_slice %51 {offsets = [0, 0], sizes = [8, 128], strides = [1, 1]} : vector<16x256xf32> to vector<8x128xf32>
    %53 = vector.extract_strided_slice %51 {offsets = [8, 128], sizes = [8, 128], strides = [1, 1]} : vector<16x256xf32> to vector<8x128xf32>
    %54 = tpu.concatenate %52, %53 in 0 : vector<8x128xf32>, vector<8x128xf32> -> vector<16x128xf32>
    %55 = arith.addf %54, %13 : vector<16x128xf32>
    %56 = arith.negf %55 : vector<16x128xf32>
    %57 = math.exp %56 : vector<16x128xf32>
    %cst_13 = arith.constant 1.000000e+00 : f32
    %58 = vector.broadcast %cst_13 : f32 to vector<16x128xf32>
    %59 = arith.addf %58, %57 : vector<16x128xf32>
    %60 = arith.divf %58, %59 : vector<16x128xf32>
    %61 = math.tanh %55 : vector<16x128xf32>
    %62 = vector.extract_strided_slice %60 {offsets = [0, 0], sizes = [16, 32], strides = [1, 1]} : vector<16x128xf32> to vector<16x32xf32>
    %63 = vector.extract_strided_slice %60 {offsets = [0, 32], sizes = [16, 32], strides = [1, 1]} : vector<16x128xf32> to vector<16x32xf32>
    %64 = vector.extract_strided_slice %60 {offsets = [0, 96], sizes = [16, 32], strides = [1, 1]} : vector<16x128xf32> to vector<16x32xf32>
    %65 = vector.extract_strided_slice %61 {offsets = [0, 64], sizes = [16, 32], strides = [1, 1]} : vector<16x128xf32> to vector<16x32xf32>
    %66 = arith.mulf %63, %50 : vector<16x32xf32>
    %67 = arith.mulf %62, %65 : vector<16x32xf32>
    %68 = arith.addf %66, %67 : vector<16x32xf32>
    %69 = math.tanh %68 : vector<16x32xf32>
    %70 = arith.mulf %64, %69 : vector<16x32xf32>
    %cst_14 = arith.constant dense<0.000000e+00> : vector<16x256xf32>
    %71 = tpu.matmul %70, %1, %cst_14 {dimension_numbers = #tpu.dot_dimension_numbers<[1], [0], [0], [1], [0, 0, 1, 1], [], []>} : vector<16x32xf32>, vector<32x256xf32>, vector<16x256xf32> -> vector<16x256xf32>
    %72 = vector.extract_strided_slice %71 {offsets = [0, 0], sizes = [8, 128], strides = [1, 1]} : vector<16x256xf32> to vector<8x128xf32>
    %73 = vector.extract_strided_slice %71 {offsets = [8, 128], sizes = [8, 128], strides = [1, 1]} : vector<16x256xf32> to vector<8x128xf32>
    %74 = tpu.concatenate %72, %73 in 0 : vector<8x128xf32>, vector<8x128xf32> -> vector<16x128xf32>
    %75 = arith.addf %74, %18 : vector<16x128xf32>
    %76 = arith.negf %75 : vector<16x128xf32>
    %77 = math.exp %76 : vector<16x128xf32>
    %cst_15 = arith.constant 1.000000e+00 : f32
    %78 = vector.broadcast %cst_15 : f32 to vector<16x128xf32>
    %79 = arith.addf %78, %77 : vector<16x128xf32>
    %80 = arith.divf %78, %79 : vector<16x128xf32>
    %81 = math.tanh %75 : vector<16x128xf32>
    %82 = vector.extract_strided_slice %80 {offsets = [0, 0], sizes = [16, 32], strides = [1, 1]} : vector<16x128xf32> to vector<16x32xf32>
    %83 = vector.extract_strided_slice %80 {offsets = [0, 32], sizes = [16, 32], strides = [1, 1]} : vector<16x128xf32> to vector<16x32xf32>
    %84 = vector.extract_strided_slice %80 {offsets = [0, 96], sizes = [16, 32], strides = [1, 1]} : vector<16x128xf32> to vector<16x32xf32>
    %85 = vector.extract_strided_slice %81 {offsets = [0, 64], sizes = [16, 32], strides = [1, 1]} : vector<16x128xf32> to vector<16x32xf32>
    %86 = arith.mulf %83, %68 : vector<16x32xf32>
    %87 = arith.mulf %82, %85 : vector<16x32xf32>
    %88 = arith.addf %86, %87 : vector<16x32xf32>
    %89 = math.tanh %88 : vector<16x32xf32>
    %90 = arith.mulf %84, %89 : vector<16x32xf32>
    %cst_16 = arith.constant dense<0.000000e+00> : vector<16x256xf32>
    %91 = tpu.matmul %90, %1, %cst_16 {dimension_numbers = #tpu.dot_dimension_numbers<[1], [0], [0], [1], [0, 0, 1, 1], [], []>} : vector<16x32xf32>, vector<32x256xf32>, vector<16x256xf32> -> vector<16x256xf32>
    %92 = vector.extract_strided_slice %91 {offsets = [0, 0], sizes = [8, 128], strides = [1, 1]} : vector<16x256xf32> to vector<8x128xf32>
    %93 = vector.extract_strided_slice %91 {offsets = [8, 128], sizes = [8, 128], strides = [1, 1]} : vector<16x256xf32> to vector<8x128xf32>
    %94 = tpu.concatenate %92, %93 in 0 : vector<8x128xf32>, vector<8x128xf32> -> vector<16x128xf32>
    %95 = arith.addf %94, %23 : vector<16x128xf32>
    %96 = arith.negf %95 : vector<16x128xf32>
    %97 = math.exp %96 : vector<16x128xf32>
    %cst_17 = arith.constant 1.000000e+00 : f32
    %98 = vector.broadcast %cst_17 : f32 to vector<16x128xf32>
    %99 = arith.addf %98, %97 : vector<16x128xf32>
    %100 = arith.divf %98, %99 : vector<16x128xf32>
    %101 = math.tanh %95 : vector<16x128xf32>
    %102 = vector.extract_strided_slice %100 {offsets = [0, 0], sizes = [16, 32], strides = [1, 1]} : vector<16x128xf32> to vector<16x32xf32>
    %103 = vector.extract_strided_slice %100 {offsets = [0, 32], sizes = [16, 32], strides = [1, 1]} : vector<16x128xf32> to vector<16x32xf32>
    %104 = vector.extract_strided_slice %100 {offsets = [0, 96], sizes = [16, 32], strides = [1, 1]} : vector<16x128xf32> to vector<16x32xf32>
    %105 = vector.extract_strided_slice %101 {offsets = [0, 64], sizes = [16, 32], strides = [1, 1]} : vector<16x128xf32> to vector<16x32xf32>
    %106 = arith.mulf %103, %88 : vector<16x32xf32>
    %107 = arith.mulf %102, %105 : vector<16x32xf32>
    %108 = arith.addf %106, %107 : vector<16x32xf32>
    %109 = math.tanh %108 : vector<16x32xf32>
    %110 = arith.mulf %104, %109 : vector<16x32xf32>
    %cst_18 = arith.constant dense<0.000000e+00> : vector<16x256xf32>
    %111 = tpu.matmul %110, %1, %cst_18 {dimension_numbers = #tpu.dot_dimension_numbers<[1], [0], [0], [1], [0, 0, 1, 1], [], []>} : vector<16x32xf32>, vector<32x256xf32>, vector<16x256xf32> -> vector<16x256xf32>
    %112 = vector.extract_strided_slice %111 {offsets = [0, 0], sizes = [8, 128], strides = [1, 1]} : vector<16x256xf32> to vector<8x128xf32>
    %113 = vector.extract_strided_slice %111 {offsets = [8, 128], sizes = [8, 128], strides = [1, 1]} : vector<16x256xf32> to vector<8x128xf32>
    %114 = tpu.concatenate %112, %113 in 0 : vector<8x128xf32>, vector<8x128xf32> -> vector<16x128xf32>
    %115 = arith.addf %114, %28 : vector<16x128xf32>
    %116 = arith.negf %115 : vector<16x128xf32>
    %117 = math.exp %116 : vector<16x128xf32>
    %cst_19 = arith.constant 1.000000e+00 : f32
    %118 = vector.broadcast %cst_19 : f32 to vector<16x128xf32>
    %119 = arith.addf %118, %117 : vector<16x128xf32>
    %120 = arith.divf %118, %119 : vector<16x128xf32>
    %121 = math.tanh %115 : vector<16x128xf32>
    %122 = vector.extract_strided_slice %120 {offsets = [0, 0], sizes = [16, 32], strides = [1, 1]} : vector<16x128xf32> to vector<16x32xf32>
    %123 = vector.extract_strided_slice %120 {offsets = [0, 32], sizes = [16, 32], strides = [1, 1]} : vector<16x128xf32> to vector<16x32xf32>
    %124 = vector.extract_strided_slice %120 {offsets = [0, 96], sizes = [16, 32], strides = [1, 1]} : vector<16x128xf32> to vector<16x32xf32>
    %125 = vector.extract_strided_slice %121 {offsets = [0, 64], sizes = [16, 32], strides = [1, 1]} : vector<16x128xf32> to vector<16x32xf32>
    %126 = arith.mulf %123, %108 : vector<16x32xf32>
    %127 = arith.mulf %122, %125 : vector<16x32xf32>
    %128 = arith.addf %126, %127 : vector<16x32xf32>
    %129 = math.tanh %128 : vector<16x32xf32>
    %130 = arith.mulf %124, %129 : vector<16x32xf32>
    %cst_20 = arith.constant dense<0.000000e+00> : vector<16x256xf32>
    %131 = tpu.matmul %130, %1, %cst_20 {dimension_numbers = #tpu.dot_dimension_numbers<[1], [0], [0], [1], [0, 0, 1, 1], [], []>} : vector<16x32xf32>, vector<32x256xf32>, vector<16x256xf32> -> vector<16x256xf32>
    %132 = vector.extract_strided_slice %131 {offsets = [0, 0], sizes = [8, 128], strides = [1, 1]} : vector<16x256xf32> to vector<8x128xf32>
    %133 = vector.extract_strided_slice %131 {offsets = [8, 128], sizes = [8, 128], strides = [1, 1]} : vector<16x256xf32> to vector<8x128xf32>
    %134 = tpu.concatenate %132, %133 in 0 : vector<8x128xf32>, vector<8x128xf32> -> vector<16x128xf32>
    %135 = arith.addf %134, %33 : vector<16x128xf32>
    %136 = arith.negf %135 : vector<16x128xf32>
    %137 = math.exp %136 : vector<16x128xf32>
    %cst_21 = arith.constant 1.000000e+00 : f32
    %138 = vector.broadcast %cst_21 : f32 to vector<16x128xf32>
    %139 = arith.addf %138, %137 : vector<16x128xf32>
    %140 = arith.divf %138, %139 : vector<16x128xf32>
    %141 = math.tanh %135 : vector<16x128xf32>
    %142 = vector.extract_strided_slice %140 {offsets = [0, 0], sizes = [16, 32], strides = [1, 1]} : vector<16x128xf32> to vector<16x32xf32>
    %143 = vector.extract_strided_slice %140 {offsets = [0, 32], sizes = [16, 32], strides = [1, 1]} : vector<16x128xf32> to vector<16x32xf32>
    %144 = vector.extract_strided_slice %140 {offsets = [0, 96], sizes = [16, 32], strides = [1, 1]} : vector<16x128xf32> to vector<16x32xf32>
    %145 = vector.extract_strided_slice %141 {offsets = [0, 64], sizes = [16, 32], strides = [1, 1]} : vector<16x128xf32> to vector<16x32xf32>
    %146 = arith.mulf %143, %128 : vector<16x32xf32>
    %147 = arith.mulf %142, %145 : vector<16x32xf32>
    %148 = arith.addf %146, %147 : vector<16x32xf32>
    %149 = math.tanh %148 : vector<16x32xf32>
    %150 = arith.mulf %144, %149 : vector<16x32xf32>
    %cst_22 = arith.constant dense<0.000000e+00> : vector<16x256xf32>
    %151 = tpu.matmul %150, %1, %cst_22 {dimension_numbers = #tpu.dot_dimension_numbers<[1], [0], [0], [1], [0, 0, 1, 1], [], []>} : vector<16x32xf32>, vector<32x256xf32>, vector<16x256xf32> -> vector<16x256xf32>
    %152 = vector.extract_strided_slice %151 {offsets = [0, 0], sizes = [8, 128], strides = [1, 1]} : vector<16x256xf32> to vector<8x128xf32>
    %153 = vector.extract_strided_slice %151 {offsets = [8, 128], sizes = [8, 128], strides = [1, 1]} : vector<16x256xf32> to vector<8x128xf32>
    %154 = tpu.concatenate %152, %153 in 0 : vector<8x128xf32>, vector<8x128xf32> -> vector<16x128xf32>
    %155 = arith.addf %154, %38 : vector<16x128xf32>
    %156 = arith.negf %155 : vector<16x128xf32>
    %157 = math.exp %156 : vector<16x128xf32>
    %cst_23 = arith.constant 1.000000e+00 : f32
    %158 = vector.broadcast %cst_23 : f32 to vector<16x128xf32>
    %159 = arith.addf %158, %157 : vector<16x128xf32>
    %160 = arith.divf %158, %159 : vector<16x128xf32>
    %161 = math.tanh %155 : vector<16x128xf32>
    %162 = vector.extract_strided_slice %160 {offsets = [0, 0], sizes = [16, 32], strides = [1, 1]} : vector<16x128xf32> to vector<16x32xf32>
    %163 = vector.extract_strided_slice %160 {offsets = [0, 32], sizes = [16, 32], strides = [1, 1]} : vector<16x128xf32> to vector<16x32xf32>
    %164 = vector.extract_strided_slice %160 {offsets = [0, 96], sizes = [16, 32], strides = [1, 1]} : vector<16x128xf32> to vector<16x32xf32>
    %165 = vector.extract_strided_slice %161 {offsets = [0, 64], sizes = [16, 32], strides = [1, 1]} : vector<16x128xf32> to vector<16x32xf32>
    %166 = arith.mulf %163, %148 : vector<16x32xf32>
    %167 = arith.mulf %162, %165 : vector<16x32xf32>
    %168 = arith.addf %166, %167 : vector<16x32xf32>
    %169 = math.tanh %168 : vector<16x32xf32>
    %170 = arith.mulf %164, %169 : vector<16x32xf32>
    %cst_24 = arith.constant dense<0.000000e+00> : vector<16x256xf32>
    %171 = tpu.matmul %170, %1, %cst_24 {dimension_numbers = #tpu.dot_dimension_numbers<[1], [0], [0], [1], [0, 0, 1, 1], [], []>} : vector<16x32xf32>, vector<32x256xf32>, vector<16x256xf32> -> vector<16x256xf32>
    %172 = vector.extract_strided_slice %171 {offsets = [0, 0], sizes = [8, 128], strides = [1, 1]} : vector<16x256xf32> to vector<8x128xf32>
    %173 = vector.extract_strided_slice %171 {offsets = [8, 128], sizes = [8, 128], strides = [1, 1]} : vector<16x256xf32> to vector<8x128xf32>
    %174 = tpu.concatenate %172, %173 in 0 : vector<8x128xf32>, vector<8x128xf32> -> vector<16x128xf32>
    %175 = arith.addf %174, %43 : vector<16x128xf32>
    %176 = arith.negf %175 : vector<16x128xf32>
    %177 = math.exp %176 : vector<16x128xf32>
    %cst_25 = arith.constant 1.000000e+00 : f32
    %178 = vector.broadcast %cst_25 : f32 to vector<16x128xf32>
    %179 = arith.addf %178, %177 : vector<16x128xf32>
    %180 = arith.divf %178, %179 : vector<16x128xf32>
    %181 = math.tanh %175 : vector<16x128xf32>
    %182 = vector.extract_strided_slice %180 {offsets = [0, 0], sizes = [16, 32], strides = [1, 1]} : vector<16x128xf32> to vector<16x32xf32>
    %183 = vector.extract_strided_slice %180 {offsets = [0, 32], sizes = [16, 32], strides = [1, 1]} : vector<16x128xf32> to vector<16x32xf32>
    %184 = vector.extract_strided_slice %180 {offsets = [0, 96], sizes = [16, 32], strides = [1, 1]} : vector<16x128xf32> to vector<16x32xf32>
    %185 = vector.extract_strided_slice %181 {offsets = [0, 64], sizes = [16, 32], strides = [1, 1]} : vector<16x128xf32> to vector<16x32xf32>
    %186 = arith.mulf %183, %168 : vector<16x32xf32>
    %187 = arith.mulf %182, %185 : vector<16x32xf32>
    %188 = arith.addf %186, %187 : vector<16x32xf32>
    %189 = math.tanh %188 : vector<16x32xf32>
    %190 = arith.mulf %184, %189 : vector<16x32xf32>
    %cst_26 = arith.constant dense<0.000000e+00> : vector<16x256xf32>
    %191 = tpu.matmul %190, %1, %cst_26 {dimension_numbers = #tpu.dot_dimension_numbers<[1], [0], [0], [1], [0, 0, 1, 1], [], []>} : vector<16x32xf32>, vector<32x256xf32>, vector<16x256xf32> -> vector<16x256xf32>
    %192 = vector.extract_strided_slice %191 {offsets = [0, 0], sizes = [8, 128], strides = [1, 1]} : vector<16x256xf32> to vector<8x128xf32>
    %193 = vector.extract_strided_slice %191 {offsets = [8, 128], sizes = [8, 128], strides = [1, 1]} : vector<16x256xf32> to vector<8x128xf32>
    %194 = tpu.concatenate %192, %193 in 0 : vector<8x128xf32>, vector<8x128xf32> -> vector<16x128xf32>
    %195 = arith.addf %194, %48 : vector<16x128xf32>
    %196 = arith.negf %195 : vector<16x128xf32>
    %197 = math.exp %196 : vector<16x128xf32>
    %cst_27 = arith.constant 1.000000e+00 : f32
    %198 = vector.broadcast %cst_27 : f32 to vector<16x128xf32>
    %199 = arith.addf %198, %197 : vector<16x128xf32>
    %200 = arith.divf %198, %199 : vector<16x128xf32>
    %201 = math.tanh %195 : vector<16x128xf32>
    %202 = vector.extract_strided_slice %200 {offsets = [0, 0], sizes = [16, 32], strides = [1, 1]} : vector<16x128xf32> to vector<16x32xf32>
    %203 = vector.extract_strided_slice %200 {offsets = [0, 32], sizes = [16, 32], strides = [1, 1]} : vector<16x128xf32> to vector<16x32xf32>
    %204 = vector.extract_strided_slice %200 {offsets = [0, 96], sizes = [16, 32], strides = [1, 1]} : vector<16x128xf32> to vector<16x32xf32>
    %205 = vector.extract_strided_slice %201 {offsets = [0, 64], sizes = [16, 32], strides = [1, 1]} : vector<16x128xf32> to vector<16x32xf32>
    %206 = arith.mulf %203, %188 : vector<16x32xf32>
    %207 = arith.mulf %202, %205 : vector<16x32xf32>
    %208 = arith.addf %206, %207 : vector<16x32xf32>
    %209 = math.tanh %208 : vector<16x32xf32>
    %210 = arith.mulf %204, %209 : vector<16x32xf32>
    %211 = vector.extract_strided_slice %210 {offsets = [0, 0], sizes = [8, 32], strides = [1, 1]} : vector<16x32xf32> to vector<8x32xf32>
    %212 = vector.extract_strided_slice %210 {offsets = [8, 0], sizes = [8, 32], strides = [1, 1]} : vector<16x32xf32> to vector<8x32xf32>
    %213 = tpu.concatenate %211, %212 in 1 : vector<8x32xf32>, vector<8x32xf32> -> vector<8x64xf32>
    %c0_28 = arith.constant 0 : index
    %c0_29 = arith.constant 0 : index
    %214 = vector.load %arg6[%c0_28, %c0_29] : memref<64x3xf32, #tpu.memory_space<vmem>>, vector<64x3xf32>
    %cst_30 = arith.constant dense<0.000000e+00> : vector<8x3xf32>
    %215 = tpu.matmul %213, %214, %cst_30 {dimension_numbers = #tpu.dot_dimension_numbers<[1], [0], [0], [1], [0, 0, 1, 1], [], []>} : vector<8x64xf32>, vector<64x3xf32>, vector<8x3xf32> -> vector<8x3xf32>
    %c0_31 = arith.constant 0 : index
    %c0_32 = arith.constant 0 : index
    %216 = vector.load %arg7[%c0_31, %c0_32] : memref<1x3xf32, #tpu.memory_space<vmem>>, vector<1x3xf32>
    %217 = vector.broadcast %216 : vector<1x3xf32> to vector<8x3xf32>
    %218 = arith.addf %215, %217 : vector<8x3xf32>
    %219 = arith.negf %218 : vector<8x3xf32>
    %220 = math.exp %219 : vector<8x3xf32>
    %cst_33 = arith.constant 1.000000e+00 : f32
    %221 = vector.broadcast %cst_33 : f32 to vector<8x3xf32>
    %222 = arith.addf %221, %220 : vector<8x3xf32>
    %223 = arith.divf %221, %222 : vector<8x3xf32>
    %c0_34 = arith.constant 0 : index
    %c0_35 = arith.constant 0 : index
    %224 = vector.load %arg8[%c0_34, %c0_35] : memref<8x3xf32, #tpu.memory_space<vmem>>, vector<8x3xf32>
    tpu.vector_store %arg8[%c0_34, %c0_35], %223 {strides = array<i32>} : memref<8x3xf32, #tpu.memory_space<vmem>>, vector<8x3xf32>,
    return
  }
}

</mosaic_0001>

<bundles_post_ra>
// kernel: tpu_custom_call.1
= control target key start
LH: loop header
LB: loop body
LE: loop exit
PB: predicated region body
PF: predicated region fallthrough
CT: control target
= control target key end

     0   :  { %13 = vsyncpa [#allocation3], 0  ;;  %s2076_s0 = inlined_call_operand.vmem [shape: f32[8,8,32], index: 0, kind: input, shape index: {}]   ;;  %s2077_s1 = inlined_call_operand.hbm [shape: f32[16,32], index: 1, kind: input, shape index: {}]   ;;  %s2078_s2 = inlined_call_operand.hbm [shape: f32[16,32], index: 2, kind: input, shape index: {}]   ;;  %s2079_s3 = inlined_call_operand.hbm [shape: f32[32,256], index: 3, kind: input, shape index: {}]   ;;  %s2080_s4 = inlined_call_operand.hbm [shape: f32[32,256], index: 4, kind: input, shape index: {}]   ;;  %s2081_s5 = inlined_call_operand.vmem [shape: f32[1,256], index: 5, kind: input, shape index: {}]   ;;  %s2082_s6 = inlined_call_operand.vmem [shape: f32[64,3], index: 6, kind: input, shape index: {}]   ;;  %s2083_s7 = inlined_call_operand.vmem [shape: f32[1,3], index: 7, kind: input, shape index: {}]   ;;  %s2084_s8 = inlined_call_operand.vmem [shape: f32[8,3], index: 8, kind: output, shape index: {}]  }
   0x1   :  { %14 = vsyncpa [#allocation5], 0 }
   0x2   :  { %15 = vsyncpa [#allocation8], 0  ;;  %s35_s29 = sshll.u32 %s2078_s2, 4  ;;  %s1661_s30 = smov [#allocation4]   ;;  %s36_s29 = int_to_ptr.hbm [resolvable:$true] %s35_s29 }
   0x3   :  { %s37_s9 = sshll.u32 %s1661_s30, 4  ;;  %s22_s12 = sshll.u32 %s2077_s1, 4  ;;  %s38_s9 = int_to_ptr.vmem [resolvable:$true] %s37_s9  ;;  %s23_s12 = int_to_ptr.hbm [resolvable:$true] %s22_s12 }
   0x4   :  { %s1662_s13 = smov 128   ;;  %s1663_s14 = smov 8  }
   0x5   :  { %43 = dma.hbm_to_vmem [thread:$0]  %s36_s29, 256, %s38_s9, [#allocation5], %s1662_s13, %s1662_s13, %s1663_s14  }
   0x6   :  { %s1664_s15 = smov [#allocation2]   ;;  %s48_s19 = sshll.u32 %s2079_s3, 4  ;;  %s49_s19 = int_to_ptr.hbm [resolvable:$true] %s48_s19 }
   0x7   :  { %s24_s16 = sshll.u32 %s1664_s15, 4  ;;  %s1665_s2 = smov [#allocation6]   ;;  %s25_s16 = int_to_ptr.vmem [resolvable:$true] %s24_s16 }
   0x8   :  { %30 = dma.hbm_to_vmem [thread:$0]  %s23_s12, 256, %s25_s16, [#allocation3], %s1662_s13, %s1662_s13, %s1663_s14  }
   0x9   :  { %s50_s20 = sshll.u32 %s1665_s2, 4  ;;  %s61_s1 = sshll.u32 %s2080_s4, 4  ;;  %s51_s20 = int_to_ptr.vmem [resolvable:$true] %s50_s20  ;;  %s62_s1 = int_to_ptr.hbm [resolvable:$true] %s61_s1 }
   0xa   :  { %s1666_s23 = smov 256   ;;  %s1667_s24 = smov 16  }
   0xb   :  { %56 = dma.hbm_to_vmem [thread:$0]  %s49_s19, 1024, %s51_s20, [#allocation5], %s1666_s23, %s1666_s23, %s1667_s24  }
   0xc   :  { %s1668_s25 = smov [#allocation7]  }
   0xd   :  { %s63_s26 = sshll.u32 %s1668_s25, 4  ;;  %s64_s26 = int_to_ptr.vmem [resolvable:$true] %s63_s26 }
   0xe   :  { %69 = dma.hbm_to_vmem [thread:$0]  %s62_s1, 1024, %s64_s26, [#allocation8], %s1666_s23, %s1666_s23, %s1667_s24  }
   0xf   :  { %1655 = dma.done.wait [#allocation3], 256  }
  0x10   :  { %1656 = vsyncadd [#allocation3], 4294967040 }
  0x11   :  { %1657 = dma.done.wait [#allocation5], 1280  }
  0x12   :  { %1658 = vsyncadd [#allocation5], 4294966016 }
  0x13   :  { %1659 = dma.done.wait [#allocation8], 1024  }
  0x14   :  { %1660 = vsyncadd [#allocation8], 4294966272  ;;  %v99_v0 = vld [vmem:[#allocation6 + $0x38] sm:$0xff]  ;;  %v1728_v1 = vld [vmem:[#allocation7 + $0x30] sm:$0xff]  ;;  %vm122_vm0 = vcmask 261120   ;;  %s1669_s9 = smov 32  }
  0x15   :  { %v97_v2 = vld [vmem:[#allocation6 + $0x28] sm:$0xff]  ;;  %200 = vmatpush.msra.mxu1 %v99_v0  ;;  %251 = vmatpush.msra.mxu2 %v1728_v1  ;;  %v1731_v3 = vld [vmem:[#allocation7 + $0x20] sm:$0xff]  ;;  %v98_v4 = vld [vmem:[#allocation6 + $0x30] sm:$0xff] }
  0x16   :  { %159 = vmatpush.msra.mxu0 %v98_v4  ;;  %v95_v5 = vld [vmem:[#allocation6 + $0x18] sm:$0xff]  ;;  %v1733_v6 = vld [vmem:[#allocation7 + $0x10] sm:$0xff]  ;;  %v96_v7 = vld [vmem:[#allocation6 + $0x20] sm:$0xff] }
  0x17   :  { %201 = vmatpush.msra.mxu1 %v97_v2  ;;  %252 = vmatpush.msra.mxu2 %v1731_v3  ;;  %v93_v8 = vld [vmem:[#allocation6 + $0x8] sm:$0xff]  ;;  %v1736_v9 = vld [vmem:[#allocation7] sm:$0xff]  ;;  %v94_v10 = vld [vmem:[#allocation6 + $0x10] sm:$0xff] }
  0x18   :  { %160 = vmatpush.msra.mxu0 %v96_v7  ;;  %v108_v11 = vld [vmem:[%s2076_s0] sm:$0xff]  ;;  %v1745_v14 = vld [vmem:[#allocation7 + $0x38] sm:$0xff]  ;;  %v1747_v15 = vld [vmem:[#allocation7 + $0x28] sm:$0xff] }
  0x19   :  { %202 = vmatpush.msra.mxu1 %v95_v5  ;;  %253 = vmatpush.msra.mxu2 %v1733_v6  ;;  %v229_v12 = vld [vmem:[#allocation2] sm:$0xff]  ;;  %v109_v16 = vld [vmem:[%s2076_s0 + $0x8] sm:$0xff]  ;;  %v1764_v17 = vld [vmem:[#allocation7 + $0x18] sm:$0xff] }
  0x1a   :  { %161 = vmatpush.msra.mxu0 %v94_v10  ;;  %v92_v13 = vld [vmem:[#allocation6] sm:$0xff]  ;;  %273 = vmatpush.msra.mxu3 %v1745_v14  ;;  %v1766_v18 = vld [vmem:[#allocation7 + $0x8] sm:$0xff]  ;;  %v110_v19 = vld [vmem:[%s2076_s0 + $0x10] sm:$0xff] }
  0x1b   :  { %203 = vmatpush.msra.mxu1 %v93_v8  ;;  %254 = vmatpush.msra.mxu2 %v1736_v9  ;;  %v230_v20 = vld [vmem:[#allocation2 + $0x8] sm:$0xff]  ;;  %v231_v21 = vld [vmem:[#allocation4] sm:$0xff]  ;;  %v111_v22 = vld [vmem:[%s2076_s0 + $0x18] sm:$0xff] }
  0x1c   :  { %1358 = vmatmul.msk.f32.vlgmr.msra.gmra.mxu1 %vm122_vm0, %v108_v11  ;;  %1366 = vmatmul.msk.f32.vlgmr.msra.gmra.mxu2 %vm122_vm0, %v229_v12  ;;  %v232_v23 = vld [vmem:[#allocation4 + $0x8] sm:$0xff]  ;;  %v112_v24 = vld [vmem:[%s2076_s0 + $0x20] sm:$0xff]  ;;  %v113_v25 = vld [vmem:[%s2076_s0 + $0x28] sm:$0xff] }
  0x1d   :  { %162 = vmatpush.msra.mxu0 %v92_v13  ;;  %389 = vmatpush.msrb.mxu2 %v1728_v1  ;;  %v114_v26 = vld [vmem:[%s2076_s0 + $0x30] sm:$0xff]  ;;  %v115_v27 = vld [vmem:[%s2076_s0 + $0x38] sm:$0xff]  ;;  %v116_v28 = vld [vmem:[%s2081_s5] sm:$0x3]  ;;  %s1670_s0 = smov 64  }
  0x1e   :  { %1350 = vmatmul.msk.f32.vlgmr.msra.gmra.mxu0 %vm122_vm0, %v108_v11  ;;  %274 = vmatpush.msra.mxu3 %v1747_v15  ;;  %v119_v29 = vperm.slane %v116_v28, 1  ;;  %v1833_v30 = vperm.slane %v116_v28, 0 }
  0x1f   :  { %779 = vmatpush.msrb.mxu0 %v1728_v1  ;;  %390 = vmatpush.msrb.mxu2 %v1731_v3 }
  0x20   :  { %801 = vmatpush.msrb.mxu1 %v1745_v14  ;;  %275 = vmatpush.msra.mxu3 %v1764_v17 }
  0x21   :  { %780 = vmatpush.msrb.mxu0 %v1731_v3  ;;  %391 = vmatpush.msrb.mxu2 %v1733_v6 }
  0x22   :  { %802 = vmatpush.msrb.mxu1 %v1747_v15  ;;  %276 = vmatpush.msra.mxu3 %v1766_v18 }
  0x23   :  { %781 = vmatpush.msrb.mxu0 %v1733_v6  ;;  %392 = vmatpush.msrb.mxu2 %v1736_v9 }
  0x24   :  { %1359 = vmatmul.msk.f32.gmra.mxu1 %vm122_vm0, %v109_v16  ;;  %1368 = vmatmul.msk.f32.vlgmr.msra.gmra.mxu3 %vm122_vm0, %v229_v12 }
  0x25   :  { %519 = vmatpush.msra.mxu2 %v1728_v1  ;;  %803 = vmatpush.msrb.mxu1 %v1764_v17 }
  0x26   :  { %1351 = vmatmul.msk.f32.gmra.mxu0 %vm122_vm0, %v109_v16  ;;  %411 = vmatpush.msrb.mxu3 %v1745_v14 }
  0x27   :  { %520 = vmatpush.msra.mxu2 %v1731_v3  ;;  %782 = vmatpush.msrb.mxu0 %v1736_v9 }
  0x28   :  { %804 = vmatpush.msrb.mxu1 %v1766_v18  ;;  %412 = vmatpush.msrb.mxu3 %v1747_v15 }
  0x29   :  { %521 = vmatpush.msra.mxu2 %v1733_v6  ;;  %1039 = vmatpush.msra.mxu0 %v1728_v1 }
  0x2a   :  { %327 = vrot.lane.b32.xlu1 %v231_v21, %s1669_s9  ;;  %1367 = vmatmul.msk.f32.gmra.mxu2 %vm122_vm0, %v230_v20 }
  0x2b   :  { %522 = vmatpush.msra.mxu2 %v1736_v9  ;;  %1040 = vmatpush.msra.mxu0 %v1731_v3 }
  0x2c   :  { %1360 = vmatmul.msk.f32.gmra.mxu1 %vm122_vm0, %v110_v19  ;;  %413 = vmatpush.msrb.mxu3 %v1764_v17 }
  0x2d   :  { %1061 = vmatpush.msra.mxu1 %v1745_v14  ;;  %1041 = vmatpush.msra.mxu0 %v1733_v6 }
  0x2e   :  { %1352 = vmatmul.msk.f32.gmra.mxu0 %vm122_vm0, %v110_v19  ;;  %1369 = vmatmul.msk.f32.gmra.mxu3 %vm122_vm0, %v230_v20 }
  0x2f   :  { %414 = vmatpush.msrb.mxu3 %v1766_v18  ;;  %1062 = vmatpush.msra.mxu1 %v1747_v15 }
  0x30   :  { %1042 = vmatpush.msra.mxu0 %v1736_v9  ;;  %329 = vrot.lane.b32.xlu2 %v232_v23, %s1669_s9 }
  0x31   :  { %541 = vmatpush.msra.mxu3 %v1745_v14  ;;  %1063 = vmatpush.msra.mxu1 %v1764_v17 }
  0x33   :  { %542 = vmatpush.msra.mxu3 %v1747_v15  ;;  %1064 = vmatpush.msra.mxu1 %v1766_v18 }
  0x34   :  { %1361 = vmatmul.msk.f32.gmra.mxu1 %vm122_vm0, %v111_v22 }
  0x35   :  { %543 = vmatpush.msra.mxu3 %v1764_v17 }
  0x36   :  { %1353 = vmatmul.msk.f32.gmra.mxu0 %vm122_vm0, %v111_v22 }
  0x37   :  { %544 = vmatpush.msra.mxu3 %v1766_v18 }
  0x3c   :  { %1362 = vmatmul.msk.f32.gmra.mxu1 %vm122_vm0, %v112_v24 }
  0x3e   :  { %1354 = vmatmul.msk.f32.gmra.mxu0 %vm122_vm0, %v112_v24 }
  0x44   :  { %1363 = vmatmul.msk.f32.gmra.mxu1 %vm122_vm0, %v113_v25 }
  0x46   :  { %1355 = vmatmul.msk.f32.gmra.mxu0 %vm122_vm0, %v113_v25 }
  0x4c   :  { %1364 = vmatmul.msk.f32.gmra.mxu1 %vm122_vm0, %v114_v26 }
  0x4e   :  { %1356 = vmatmul.msk.f32.gmra.mxu0 %vm122_vm0, %v114_v26 }
  0x54   :  { %1365 = vmatmul.msk.f32.gmra.mxu1 %vm122_vm0, %v115_v27 }
  0x56   :  { %1357 = vmatmul.msk.f32.gmra.mxu0 %vm122_vm0, %v115_v27 }
  0x99   :  { %v205_v31 = vpop.f32.mrf.mxu1 }
  0x9a   :  { %v1835_v32 = vadd.f32 %v205_v31, %v119_v29 }
  0x9b   :  { %v164_v33 = vpop.f32.mrf.mxu0 }
  0x9c   :  { %v165_v34 = vadd.f32 %v164_v33, %v1833_v30  ;;  %v328_v33 = vpop.permute.xlu1 %327 }
  0x9f   :  { %v256_v35 = vpop.f32.mrf.mxu2 }
  0xa0   :  { %v283_v36 = vadd.f32 %v256_v35, %v165_v34 }
  0xa1   :  { %v208_v37 = vpop.f32.mrf.mxu1 }
  0xa2   :  { %1427 = vtanh.f32 %v283_v36  ;;  %v1838_v38 = vadd.f32 %v208_v37, %v119_v29  ;;  %v1370_v57 = vmul.f32 -1.442695, %v283_v36 }
  0xa7   :  { %v278_v42 = vpop.f32.mrf.mxu3 }
  0xa8   :  { %v1428_v39 = vpop.eup %1427 }
  0xa9   :  { %v211_v40 = vpop.f32.mrf.mxu1  ;;  %337 = vrot.lane.b32.xlu0 %v1428_v39, %s1670_s0  ;;  %v330_v39 = vpop.permute.xlu2 %329 }
  0xaa   :  { %v1841_v41 = vadd.f32 %v211_v40, %v119_v29 }
  0xad   :  { %v259_v43 = vpop.f32.mrf.mxu2 }
  0xb1   :  { %v214_v44 = vpop.f32.mrf.mxu1  ;;  %v280_v53 = vpop.f32.mrf.mxu3 }
  0xb2   :  { %v1843_v45 = vadd.f32 %v214_v44, %v119_v29 }
  0xb9   :  { %v217_v46 = vpop.f32.mrf.mxu1 }
  0xba   :  { %v1845_v47 = vadd.f32 %v217_v46, %v119_v29 }
  0xc1   :  { %v220_v48 = vpop.f32.mrf.mxu1 }
  0xc2   :  { %v1847_v49 = vadd.f32 %v220_v48, %v119_v29 }
  0xc9   :  { %v223_v50 = vpop.f32.mrf.mxu1 }
  0xca   :  { %v1849_v51 = vadd.f32 %v223_v50, %v119_v29 }
  0xd1   :  { %v226_v52 = vpop.f32.mrf.mxu1 }
  0xd2   :  { %v227_v54 = vadd.f32 %v226_v52, %v119_v29 }
  0xd4   :  { %v284_v55 = vadd.f32 %v280_v53, %v227_v54 }
  0xd6   :  { %1429 = vtanh.f32 %v284_v55  ;;  %v1371_v12 = vmul.f32 -1.442695, %v284_v55  ;;  %v167_v55 = vpop.f32.mrf.mxu0 }
  0xd7   :  { %1431 = vpow2.f32 %v1370_v57 }
  0xdc   :  { %v1430_v56 = vpop.eup %1429 }
  0xdd   :  { %339 = vrot.lane.b32.xlu0 %v1430_v56, %s1670_s0  ;;  %v1432_v58 = vpop.eup %1431  ;;  %v168_v56 = vadd.f32 %v167_v55, %v1833_v30 }
  0xde   :  { %v291_v59 = vadd.f32 1.0, %v1432_v58 }
  0xe0   :  { %1433 = vrcp.f32 %v291_v59  ;;  %vm298_vm1 = vweird.f32 %v291_v59  ;;  %v304_v0 = vand.u32 2147483648, %v291_v59  ;;  %v302_v4 = vand.u32 2147483647, %v291_v59 }
  0xe1   :  { %1435 = vpow2.f32 %v1371_v12 }
  0xe2   :  { %v305_v5 = vor.u32 1.1754944e-38, %v304_v0  ;;  %vm303_vm4 = vcmp.eq.f32.partialorder %v302_v4, 8.507059e+37 }
  0xe6   :  { %v1434_v60 = vpop.eup %1433 }
  0xe7   :  { %v294_v61 = vmul.f32 %v1434_v60, %v291_v59  ;;  %vm299_vm2 = vweird.f32 %v1434_v60  ;;  %v1436_v13 = vpop.eup %1435 }
  0xe8   :  { %vm300_vm3 = vmor %vm298_vm1, %vm299_vm2  ;;  %v292_v16 = vadd.f32 1.0, %v1436_v13 }
  0xe9   :  { %v295_v62 = vsub.f32 1.0, %v294_v61 }
  0xea   :  { %1437 = vrcp.f32 %v292_v16  ;;  %v319_v24 = vand.u32 2147483648, %v292_v16  ;;  %vm313_vm6 = vweird.f32 %v292_v16  ;;  %v317_v25 = vand.u32 2147483647, %v292_v16 }
  0xeb   :  { %v296_v63 = vmul.f32 %v1434_v60, %v295_v62 }
  0xec   :  { %v320_v27 = vor.u32 1.1754944e-38, %v319_v24  ;;  %vm318_vm8 = vcmp.eq.f32.partialorder %v317_v25, 8.507059e+37 }
  0xed   :  { %v297_v2 = vadd.f32 %v1434_v60, %v296_v63 }
  0xef   :  { %v301_v7 = vsel %vm300_vm3, %v1434_v60, %v297_v2 }
  0xf0   :  { %v306_v8 = vsel %vm303_vm4, %v305_v5, %v301_v7  ;;  %v1438_v19 = vpop.eup %1437 }
  0xf1   :  { %v309_v20 = vmul.f32 %v1438_v19, %v292_v16  ;;  %vm314_vm5 = vweird.f32 %v1438_v19  ;;  %v333_v34 = vmul.f32 %v328_v33, %v306_v8 }
  0xf2   :  { %vm315_vm7 = vmor %vm313_vm6, %vm314_vm5 }
  0xf3   :  { %v310_v21 = vsub.f32 1.0, %v309_v20 }
  0xf5   :  { %v311_v22 = vmul.f32 %v1438_v19, %v310_v21 }
  0xf7   :  { %v312_v23 = vadd.f32 %v1438_v19, %v311_v22 }
  0xf9   :  { %v316_v26 = vsel %vm315_vm7, %v1438_v19, %v312_v23 }
  0xfa   :  { %v321_v28 = vsel %vm318_vm8, %v320_v27, %v316_v26 }
  0xfb   :  { %v334_v40 = vmul.f32 %v330_v39, %v321_v28 }
 0x11b   :  { %v338_v10 = vpop.permute.xlu0 %337 }
 0x11c   :  { %v343_v11 = vmul.f32 %v338_v10, %v306_v8 }
 0x11e   :  { %347 = vrot.lane.b32.xlu1 %v343_v11, %s1669_s9 }
 0x14f   :  { %v340_v29 = vpop.permute.xlu0 %339 }
 0x150   :  { %v344_v31 = vmul.f32 %v340_v29, %v321_v28 }
 0x152   :  { %349 = vrot.lane.b32.xlu2 %v344_v31, %s1669_s9 }
 0x190   :  { %v348_v35 = vpop.permute.xlu1 %347 }
 0x191   :  { %v1854_v36 = vadd.f32 %v348_v35, %v333_v34 }
 0x193   :  { %1439 = vtanh.f32 %v1854_v36 }
 0x199   :  { %v1440_v37 = vpop.eup %1439 }
 0x19a   :  { %359 = vrot.lane.b32.xlu0 %v1440_v37, %s1670_s0 }
 0x1ac   :  { %v350_v42 = vpop.permute.xlu2 %349 }
 0x1ad   :  { %v1858_v43 = vadd.f32 %v350_v42, %v334_v40 }
 0x1af   :  { %1441 = vtanh.f32 %v1858_v43 }
 0x1b5   :  { %v1442_v44 = vpop.eup %1441 }
 0x1b6   :  { %361 = vrot.lane.b32.xlu1 %v1442_v44, %s1670_s0 }
 0x20c   :  { %v360_v46 = vpop.permute.xlu0 %359 }
 0x20d   :  { %v365_v48 = vmul.f32 %v360_v46, %v306_v8 }
 0x20f   :  { %369 = vrot.lane.b32.xlu2 %v365_v48, %s1669_s9 }
 0x228   :  { %v362_v50 = vpop.permute.xlu1 %361 }
 0x229   :  { %v366_v52 = vmul.f32 %v362_v50, %v321_v28 }
 0x22b   :  { %371 = vrot.lane.b32.xlu0 %v366_v52, %s1669_s9 }
 0x269   :  { %v370_v53 = vpop.permute.xlu2 %369 }
 0x26a   :  { %1372 = vmatmul.msk.f32.vlgmr.msrb.gmra.mxu2 %vm122_vm0, %v370_v53  ;;  %1374 = vmatmul.msk.f32.vlgmr.msrb.gmra.mxu3 %vm122_vm0, %v370_v53 }
 0x26b   :  { %649 = vmatpush.msrb.mxu2 %v1728_v1  ;;  %671 = vmatpush.msrb.mxu3 %v1745_v14 }
 0x26d   :  { %650 = vmatpush.msrb.mxu2 %v1731_v3  ;;  %672 = vmatpush.msrb.mxu3 %v1747_v15 }
 0x26f   :  { %651 = vmatpush.msrb.mxu2 %v1733_v6  ;;  %673 = vmatpush.msrb.mxu3 %v1764_v17 }
 0x271   :  { %652 = vmatpush.msrb.mxu2 %v1736_v9  ;;  %674 = vmatpush.msrb.mxu3 %v1766_v18 }
 0x29d   :  { %v372_v54 = vpop.permute.xlu0 %371 }
 0x29e   :  { %1373 = vmatmul.msk.f32.gmra.mxu2 %vm122_vm0, %v372_v54  ;;  %1375 = vmatmul.msk.f32.gmra.mxu3 %vm122_vm0, %v372_v54 }
 0x2ed   :  { %v394_v57 = vpop.f32.mrf.mxu2  ;;  %v416_v58 = vpop.f32.mrf.mxu3 }
 0x2ee   :  { %v421_v59 = vadd.f32 %v394_v57, %v168_v56 }
 0x2f0   :  { %1443 = vtanh.f32 %v421_v59  ;;  %v1376_v2 = vmul.f32 -1.442695, %v421_v59 }
 0x2f6   :  { %v1444_v60 = vpop.eup %1443 }
 0x2f7   :  { %467 = vrot.lane.b32.xlu1 %v1444_v60, %s1670_s0  ;;  %v170_v60 = vpop.f32.mrf.mxu0 }
 0x321   :  { %v397_v61 = vpop.f32.mrf.mxu2  ;;  %v418_v62 = vpop.f32.mrf.mxu3 }
 0x322   :  { %v422_v63 = vadd.f32 %v418_v62, %v1849_v51  ;;  %v171_v61 = vadd.f32 %v170_v60, %v1833_v30 }
 0x324   :  { %1445 = vtanh.f32 %v422_v63  ;;  %v1377_v10 = vmul.f32 -1.442695, %v422_v63 }
 0x325   :  { %1447 = vpow2.f32 %v1376_v2 }
 0x32a   :  { %v1446_v0 = vpop.eup %1445 }
 0x32b   :  { %469 = vrot.lane.b32.xlu2 %v1446_v0, %s1670_s0  ;;  %v1448_v4 = vpop.eup %1447 }
 0x32c   :  { %v429_v5 = vadd.f32 1.0, %v1448_v4 }
 0x32e   :  { %1449 = vrcp.f32 %v429_v5  ;;  %v442_v19 = vand.u32 2147483648, %v429_v5  ;;  %vm436_vm10 = vweird.f32 %v429_v5  ;;  %v440_v51 = vand.u32 2147483647, %v429_v5 }
 0x32f   :  { %1451 = vpow2.f32 %v1377_v10 }
 0x330   :  { %v443_v22 = vor.u32 1.1754944e-38, %v442_v19  ;;  %vm441_vm12 = vcmp.eq.f32.partialorder %v440_v51, 8.507059e+37 }
 0x334   :  { %v1450_v7 = vpop.eup %1449 }
 0x335   :  { %v432_v8 = vmul.f32 %v1450_v7, %v429_v5  ;;  %v1452_v13 = vpop.eup %1451  ;;  %vm437_vm9 = vweird.f32 %v1450_v7 }
 0x336   :  { %v430_v20 = vadd.f32 1.0, %v1452_v13  ;;  %vm438_vm11 = vmor %vm436_vm10, %vm437_vm9 }
 0x337   :  { %v433_v11 = vsub.f32 1.0, %v432_v8 }
 0x338   :  { %1453 = vrcp.f32 %v430_v20  ;;  %v457_v33 = vand.u32 2147483648, %v430_v20  ;;  %vm451_vm14 = vweird.f32 %v430_v20  ;;  %v455_v34 = vand.u32 2147483647, %v430_v20 }
 0x339   :  { %v434_v12 = vmul.f32 %v1450_v7, %v433_v11 }
 0x33a   :  { %v458_v37 = vor.u32 1.1754944e-38, %v457_v33  ;;  %vm456_vm1 = vcmp.eq.f32.partialorder %v455_v34, 8.507059e+37 }
 0x33b   :  { %v435_v16 = vadd.f32 %v1450_v7, %v434_v12 }
 0x33d   :  { %v439_v21 = vsel %vm438_vm11, %v1450_v7, %v435_v16 }
 0x33e   :  { %v444_v24 = vsel %vm441_vm12, %v443_v22, %v439_v21  ;;  %v1454_v26 = vpop.eup %1453 }
 0x33f   :  { %v447_v27 = vmul.f32 %v1454_v26, %v430_v20  ;;  %vm452_vm13 = vweird.f32 %v1454_v26  ;;  %v463_v44 = vmul.f32 %v444_v24, %v1854_v36 }
 0x340   :  { %vm453_vm15 = vmor %vm451_vm14, %vm452_vm13 }
 0x341   :  { %v448_v28 = vsub.f32 1.0, %v447_v27 }
 0x343   :  { %v449_v29 = vmul.f32 %v1454_v26, %v448_v28 }
 0x345   :  { %v450_v31 = vadd.f32 %v1454_v26, %v449_v29 }
 0x347   :  { %v454_v35 = vsel %vm453_vm15, %v1454_v26, %v450_v31 }
 0x348   :  { %v459_v40 = vsel %vm456_vm1, %v458_v37, %v454_v35 }
 0x349   :  { %v464_v52 = vmul.f32 %v459_v40, %v1858_v43 }
 0x369   :  { %v468_v23 = vpop.permute.xlu1 %467 }
 0x36a   :  { %v473_v25 = vmul.f32 %v468_v23, %v444_v24 }
 0x36c   :  { %477 = vrot.lane.b32.xlu0 %v473_v25, %s1669_s9 }
 0x385   :  { %v470_v39 = vpop.permute.xlu2 %469 }
 0x386   :  { %v474_v42 = vmul.f32 %v470_v39, %v459_v40 }
 0x388   :  { %479 = vrot.lane.b32.xlu1 %v474_v42, %s1669_s9 }
 0x3de   :  { %v478_v46 = vpop.permute.xlu0 %477 }
 0x3df   :  { %v1883_v48 = vadd.f32 %v478_v46, %v463_v44 }
 0x3e1   :  { %1455 = vtanh.f32 %v1883_v48 }
 0x3e7   :  { %v1456_v50 = vpop.eup %1455 }
 0x3e8   :  { %489 = vrot.lane.b32.xlu2 %v1456_v50, %s1670_s0 }
 0x3fa   :  { %v480_v53 = vpop.permute.xlu1 %479 }
 0x3fb   :  { %v1888_v54 = vadd.f32 %v480_v53, %v464_v52 }
 0x3fd   :  { %1457 = vtanh.f32 %v1888_v54 }
 0x403   :  { %v1458_v55 = vpop.eup %1457 }
 0x404   :  { %491 = vrot.lane.b32.xlu0 %v1458_v55, %s1670_s0 }
 0x442   :  { %v490_v56 = vpop.permute.xlu2 %489 }
 0x443   :  { %v495_v36 = vmul.f32 %v490_v56, %v444_v24 }
 0x445   :  { %499 = vrot.lane.b32.xlu1 %v495_v36, %s1669_s9 }
 0x476   :  { %v492_v57 = vpop.permute.xlu0 %491 }
 0x477   :  { %v496_v58 = vmul.f32 %v492_v57, %v459_v40 }
 0x479   :  { %501 = vrot.lane.b32.xlu2 %v496_v58, %s1669_s9 }
 0x4b7   :  { %v500_v59 = vpop.permute.xlu1 %499 }
 0x4b8   :  { %1378 = vmatmul.msk.f32.vlgmr.msra.gmra.mxu2 %vm122_vm0, %v500_v59  ;;  %1380 = vmatmul.msk.f32.vlgmr.msra.gmra.mxu3 %vm122_vm0, %v500_v59 }
 0x4b9   :  { %909 = vmatpush.msra.mxu2 %v1728_v1  ;;  %931 = vmatpush.msra.mxu3 %v1745_v14 }
 0x4bb   :  { %910 = vmatpush.msra.mxu2 %v1731_v3  ;;  %932 = vmatpush.msra.mxu3 %v1747_v15 }
 0x4bd   :  { %911 = vmatpush.msra.mxu2 %v1733_v6  ;;  %933 = vmatpush.msra.mxu3 %v1764_v17 }
 0x4bf   :  { %912 = vmatpush.msra.mxu2 %v1736_v9  ;;  %934 = vmatpush.msra.mxu3 %v1766_v18 }
 0x4d3   :  { %v502_v43 = vpop.permute.xlu2 %501 }
 0x4d4   :  { %1379 = vmatmul.msk.f32.gmra.mxu2 %vm122_vm0, %v502_v43  ;;  %1381 = vmatmul.msk.f32.gmra.mxu3 %vm122_vm0, %v502_v43 }
 0x53b   :  { %v524_v62 = vpop.f32.mrf.mxu2  ;;  %v546_v63 = vpop.f32.mrf.mxu3 }
 0x53c   :  { %v551_v0 = vadd.f32 %v524_v62, %v171_v61 }
 0x53e   :  { %1459 = vtanh.f32 %v551_v0  ;;  %v1382_v10 = vmul.f32 -1.442695, %v551_v0 }
 0x544   :  { %v1460_v2 = vpop.eup %1459 }
 0x545   :  { %597 = vrot.lane.b32.xlu0 %v1460_v2, %s1670_s0 }
 0x557   :  { %v527_v4 = vpop.f32.mrf.mxu2  ;;  %v548_v5 = vpop.f32.mrf.mxu3 }
 0x558   :  { %v552_v7 = vadd.f32 %v548_v5, %v1847_v49 }
 0x55a   :  { %1461 = vtanh.f32 %v552_v7  ;;  %v1383_v19 = vmul.f32 -1.442695, %v552_v7 }
 0x55b   :  { %1463 = vpow2.f32 %v1382_v10 }
 0x560   :  { %v1462_v8 = vpop.eup %1461 }
 0x561   :  { %599 = vrot.lane.b32.xlu1 %v1462_v8, %s1670_s0  ;;  %v1464_v11 = vpop.eup %1463 }
 0x562   :  { %v559_v12 = vadd.f32 1.0, %v1464_v11 }
 0x564   :  { %1465 = vrcp.f32 %v559_v12  ;;  %v572_v23 = vand.u32 2147483648, %v559_v12  ;;  %vm566_vm3 = vweird.f32 %v559_v12  ;;  %v570_v49 = vand.u32 2147483647, %v559_v12 }
 0x565   :  { %1467 = vpow2.f32 %v1383_v19 }
 0x566   :  { %v573_v26 = vor.u32 1.1754944e-38, %v572_v23  ;;  %vm571_vm5 = vcmp.eq.f32.partialorder %v570_v49, 8.507059e+37 }
 0x56a   :  { %v1466_v13 = vpop.eup %1465 }
 0x56b   :  { %v562_v16 = vmul.f32 %v1466_v13, %v559_v12  ;;  %v1468_v21 = vpop.eup %1467  ;;  %vm567_vm2 = vweird.f32 %v1466_v13 }
 0x56c   :  { %v560_v24 = vadd.f32 1.0, %v1468_v21  ;;  %vm568_vm4 = vmor %vm566_vm3, %vm567_vm2 }
 0x56d   :  { %v563_v51 = vsub.f32 1.0, %v562_v16 }
 0x56e   :  { %1469 = vrcp.f32 %v560_v24  ;;  %v587_v39 = vand.u32 2147483648, %v560_v24  ;;  %vm581_vm7 = vweird.f32 %v560_v24  ;;  %v585_v40 = vand.u32 2147483647, %v560_v24 }
 0x56f   :  { %v564_v20 = vmul.f32 %v1466_v13, %v563_v51 }
 0x570   :  { %v588_v44 = vor.u32 1.1754944e-38, %v587_v39  ;;  %vm586_vm9 = vcmp.eq.f32.partialorder %v585_v40, 8.507059e+37 }
 0x571   :  { %v565_v22 = vadd.f32 %v1466_v13, %v564_v20 }
 0x573   :  { %v569_v25 = vsel %vm568_vm4, %v1466_v13, %v565_v22 }
 0x574   :  { %v574_v27 = vsel %vm571_vm5, %v573_v26, %v569_v25  ;;  %v1470_v31 = vpop.eup %1469 }
 0x575   :  { %v577_v33 = vmul.f32 %v1470_v31, %v560_v24  ;;  %vm582_vm6 = vweird.f32 %v1470_v31  ;;  %v593_v53 = vmul.f32 %v574_v27, %v1883_v48 }
 0x576   :  { %vm583_vm8 = vmor %vm581_vm7, %vm582_vm6 }
 0x577   :  { %v578_v34 = vsub.f32 1.0, %v577_v33 }
 0x579   :  { %v579_v35 = vmul.f32 %v1470_v31, %v578_v34 }
 0x57b   :  { %v580_v37 = vadd.f32 %v1470_v31, %v579_v35 }
 0x57d   :  { %v584_v42 = vsel %vm583_vm8, %v1470_v31, %v580_v37 }
 0x57e   :  { %v589_v50 = vsel %vm586_vm9, %v588_v44, %v584_v42 }
 0x57f   :  { %v594_v57 = vmul.f32 %v589_v50, %v1888_v54 }
 0x5b7   :  { %v598_v28 = vpop.permute.xlu0 %597 }
 0x5b8   :  { %v603_v29 = vmul.f32 %v598_v28, %v574_v27 }
 0x5ba   :  { %607 = vrot.lane.b32.xlu2 %v603_v29, %s1669_s9 }
 0x5d3   :  { %v600_v46 = vpop.permute.xlu1 %599 }
 0x5d4   :  { %v604_v52 = vmul.f32 %v600_v46, %v589_v50 }
 0x5d6   :  { %609 = vrot.lane.b32.xlu0 %v604_v52, %s1669_s9 }
 0x614   :  { %v608_v55 = vpop.permute.xlu2 %607 }
 0x615   :  { %v1913_v56 = vadd.f32 %v608_v55, %v593_v53 }
 0x617   :  { %1471 = vtanh.f32 %v1913_v56 }
 0x61d   :  { %v1472_v36 = vpop.eup %1471 }
 0x61e   :  { %619 = vrot.lane.b32.xlu1 %v1472_v36, %s1670_s0 }
 0x648   :  { %v610_v58 = vpop.permute.xlu0 %609 }
 0x649   :  { %v1918_v59 = vadd.f32 %v610_v58, %v594_v57 }
 0x64b   :  { %1473 = vtanh.f32 %v1918_v59 }
 0x651   :  { %v1474_v43 = vpop.eup %1473 }
 0x652   :  { %621 = vrot.lane.b32.xlu2 %v1474_v43, %s1670_s0 }
 0x690   :  { %v620_v60 = vpop.permute.xlu1 %619 }
 0x691   :  { %v625_v48 = vmul.f32 %v620_v60, %v574_v27 }
 0x693   :  { %629 = vrot.lane.b32.xlu0 %v625_v48, %s1669_s9 }
 0x6ac   :  { %v622_v61 = vpop.permute.xlu2 %621 }
 0x6ad   :  { %v626_v62 = vmul.f32 %v622_v61, %v589_v50 }
 0x6af   :  { %631 = vrot.lane.b32.xlu1 %v626_v62, %s1669_s9 }
 0x705   :  { %v630_v63 = vpop.permute.xlu0 %629 }
 0x706   :  { %1384 = vmatmul.msk.f32.vlgmr.msrb.gmra.mxu2 %vm122_vm0, %v630_v63  ;;  %1386 = vmatmul.msk.f32.vlgmr.msrb.gmra.mxu3 %vm122_vm0, %v630_v63 }
 0x707   :  { %1169 = vmatpush.msrb.mxu2 %v1728_v1  ;;  %1191 = vmatpush.msrb.mxu3 %v1745_v14  ;;  %v173_v1 = vpop.f32.mrf.mxu0 }
 0x708   :  { %v174_v14 = vadd.f32 %v173_v1, %v1833_v30 }
 0x709   :  { %1170 = vmatpush.msrb.mxu2 %v1731_v3  ;;  %1192 = vmatpush.msrb.mxu3 %v1747_v15 }
 0x70b   :  { %1171 = vmatpush.msrb.mxu2 %v1733_v6  ;;  %1193 = vmatpush.msrb.mxu3 %v1764_v17 }
 0x70d   :  { %1172 = vmatpush.msrb.mxu2 %v1736_v9  ;;  %1194 = vmatpush.msrb.mxu3 %v1766_v18 }
 0x70f   :  { %v176_v48 = vpop.f32.mrf.mxu0 }
 0x717   :  { %v1958_v61 = vpop.f32.mrf.mxu0 }
 0x71f   :  { %v1960_v62 = vpop.f32.mrf.mxu0 }
 0x721   :  { %v632_v54 = vpop.permute.xlu1 %631 }
 0x722   :  { %1385 = vmatmul.msk.f32.gmra.mxu2 %vm122_vm0, %v632_v54  ;;  %1387 = vmatmul.msk.f32.gmra.mxu3 %vm122_vm0, %v632_v54  ;;  %v177_v54 = vadd.f32 %v176_v48, %v1833_v30 }
 0x727   :  { %v1962_v63 = vpop.f32.mrf.mxu0 }
 0x789   :  { %v654_v0 = vpop.f32.mrf.mxu2  ;;  %v676_v3 = vpop.f32.mrf.mxu3 }
 0x78a   :  { %v681_v2 = vadd.f32 %v654_v0, %v174_v14 }
 0x78c   :  { %1475 = vtanh.f32 %v681_v2  ;;  %v1388_v4 = vmul.f32 -1.442695, %v681_v2 }
 0x792   :  { %v1476_v15 = vpop.eup %1475 }
 0x793   :  { %727 = vrot.lane.b32.xlu2 %v1476_v15, %s1670_s0 }
 0x7a5   :  { %v657_v6 = vpop.f32.mrf.mxu2  ;;  %v678_v17 = vpop.f32.mrf.mxu3 }
 0x7a6   :  { %v682_v9 = vadd.f32 %v678_v17, %v1845_v47 }
 0x7a8   :  { %1477 = vtanh.f32 %v682_v9  ;;  %v1389_v23 = vmul.f32 -1.442695, %v682_v9 }
 0x7a9   :  { %1479 = vpow2.f32 %v1388_v4 }
 0x7ae   :  { %v1478_v18 = vpop.eup %1477 }
 0x7af   :  { %729 = vrot.lane.b32.xlu0 %v1478_v18, %s1670_s0  ;;  %v1480_v5 = vpop.eup %1479 }
 0x7b0   :  { %v689_v7 = vadd.f32 1.0, %v1480_v5 }
 0x7b2   :  { %1481 = vrcp.f32 %v689_v7  ;;  %v702_v16 = vand.u32 2147483648, %v689_v7  ;;  %vm696_vm11 = vweird.f32 %v689_v7  ;;  %v700_v19 = vand.u32 2147483647, %v689_v7 }
 0x7b3   :  { %1483 = vpow2.f32 %v1389_v23 }
 0x7b4   :  { %v703_v51 = vor.u32 1.1754944e-38, %v702_v16  ;;  %vm701_vm13 = vcmp.eq.f32.partialorder %v700_v19, 8.507059e+37 }
 0x7b8   :  { %v1482_v8 = vpop.eup %1481 }
 0x7b9   :  { %v692_v10 = vmul.f32 %v1482_v8, %v689_v7  ;;  %vm697_vm10 = vweird.f32 %v1482_v8  ;;  %v1484_v49 = vpop.eup %1483 }
 0x7ba   :  { %vm698_vm12 = vmor %vm696_vm11, %vm697_vm10  ;;  %v690_v24 = vadd.f32 1.0, %v1484_v49 }
 0x7bb   :  { %v693_v11 = vsub.f32 1.0, %v692_v10 }
 0x7bc   :  { %1485 = vrcp.f32 %v690_v24  ;;  %v717_v31 = vand.u32 2147483648, %v690_v24  ;;  %vm711_vm15 = vweird.f32 %v690_v24  ;;  %v715_v33 = vand.u32 2147483647, %v690_v24 }
 0x7bd   :  { %v694_v12 = vmul.f32 %v1482_v8, %v693_v11 }
 0x7be   :  { %v718_v35 = vor.u32 1.1754944e-38, %v717_v31  ;;  %vm716_vm2 = vcmp.eq.f32.partialorder %v715_v33, 8.507059e+37 }
 0x7bf   :  { %v695_v13 = vadd.f32 %v1482_v8, %v694_v12 }
 0x7c1   :  { %v699_v47 = vsel %vm698_vm12, %v1482_v8, %v695_v13 }
 0x7c2   :  { %v704_v21 = vsel %vm701_vm13, %v703_v51, %v699_v47  ;;  %v1486_v25 = vpop.eup %1485 }
 0x7c3   :  { %v707_v26 = vmul.f32 %v1486_v25, %v690_v24  ;;  %vm712_vm14 = vweird.f32 %v1486_v25  ;;  %v723_v42 = vmul.f32 %v704_v21, %v1913_v56 }
 0x7c4   :  { %vm713_vm1 = vmor %vm711_vm15, %vm712_vm14 }
 0x7c5   :  { %v708_v27 = vsub.f32 1.0, %v707_v26 }
 0x7c7   :  { %v709_v28 = vmul.f32 %v1486_v25, %v708_v27 }
 0x7c9   :  { %v710_v29 = vadd.f32 %v1486_v25, %v709_v28 }
 0x7cb   :  { %v714_v34 = vsel %vm713_vm1, %v1486_v25, %v710_v29 }
 0x7cc   :  { %v719_v39 = vsel %vm716_vm2, %v718_v35, %v714_v34 }
 0x7cd   :  { %v724_v52 = vmul.f32 %v719_v39, %v1918_v59 }
 0x7ed   :  { %v728_v20 = vpop.permute.xlu2 %727 }
 0x7ee   :  { %v733_v22 = vmul.f32 %v728_v20, %v704_v21 }
 0x7f0   :  { %737 = vrot.lane.b32.xlu1 %v733_v22, %s1669_s9 }
 0x821   :  { %v730_v37 = vpop.permute.xlu0 %729 }
 0x822   :  { %v734_v40 = vmul.f32 %v730_v37, %v719_v39 }
 0x824   :  { %739 = vrot.lane.b32.xlu2 %v734_v40, %s1669_s9 }
 0x862   :  { %v738_v44 = vpop.permute.xlu1 %737 }
 0x863   :  { %v1943_v46 = vadd.f32 %v738_v44, %v723_v42 }
 0x865   :  { %1487 = vtanh.f32 %v1943_v46 }
 0x86b   :  { %v1488_v50 = vpop.eup %1487 }
 0x86c   :  { %749 = vrot.lane.b32.xlu0 %v1488_v50, %s1670_s0 }
 0x87e   :  { %v740_v53 = vpop.permute.xlu2 %739 }
 0x87f   :  { %v1948_v55 = vadd.f32 %v740_v53, %v724_v52 }
 0x881   :  { %1489 = vtanh.f32 %v1948_v55 }
 0x887   :  { %v1490_v36 = vpop.eup %1489 }
 0x888   :  { %751 = vrot.lane.b32.xlu1 %v1490_v36, %s1670_s0 }
 0x8de   :  { %v750_v57 = vpop.permute.xlu0 %749 }
 0x8df   :  { %v755_v56 = vmul.f32 %v750_v57, %v704_v21 }
 0x8e1   :  { %759 = vrot.lane.b32.xlu2 %v755_v56, %s1669_s9 }
 0x8fa   :  { %v752_v58 = vpop.permute.xlu1 %751 }
 0x8fb   :  { %v756_v43 = vmul.f32 %v752_v58, %v719_v39 }
 0x8fd   :  { %761 = vrot.lane.b32.xlu0 %v756_v43, %s1669_s9  ;;  %v180_v43 = vadd.f32 %v1958_v61, %v1833_v30 }
 0x93b   :  { %v760_v60 = vpop.permute.xlu2 %759 }
 0x93c   :  { %1390 = vmatmul.msk.f32.vlgmr.msrb.gmra.mxu0 %vm122_vm0, %v760_v60  ;;  %1392 = vmatmul.msk.f32.vlgmr.msrb.gmra.mxu1 %vm122_vm0, %v760_v60 }
 0x96f   :  { %v762_v59 = vpop.permute.xlu0 %761 }
 0x970   :  { %1391 = vmatmul.msk.f32.gmra.mxu0 %vm122_vm0, %v762_v59  ;;  %1393 = vmatmul.msk.f32.gmra.mxu1 %vm122_vm0, %v762_v59 }
 0x9b9   :  { %v784_v1 = vpop.f32.mrf.mxu0  ;;  %v806_v14 = vpop.f32.mrf.mxu1 }
 0x9ba   :  { %v811_v0 = vadd.f32 %v784_v1, %v177_v54 }
 0x9bc   :  { %1491 = vtanh.f32 %v811_v0  ;;  %v1394_v9 = vmul.f32 -1.442695, %v811_v0 }
 0x9c2   :  { %v1492_v3 = vpop.eup %1491 }
 0x9c3   :  { %857 = vrot.lane.b32.xlu1 %v1492_v3, %s1670_s0 }
 0x9ed   :  { %v787_v2 = vpop.f32.mrf.mxu0  ;;  %v808_v15 = vpop.f32.mrf.mxu1 }
 0x9ee   :  { %v812_v6 = vadd.f32 %v808_v15, %v1843_v45 }
 0x9f0   :  { %1493 = vtanh.f32 %v812_v6  ;;  %v1395_v8 = vmul.f32 -1.442695, %v812_v6 }
 0x9f1   :  { %1495 = vpow2.f32 %v1394_v9 }
 0x9f6   :  { %v1494_v17 = vpop.eup %1493 }
 0x9f7   :  { %859 = vrot.lane.b32.xlu2 %v1494_v17, %s1670_s0  ;;  %v1496_v18 = vpop.eup %1495 }
 0x9f8   :  { %v819_v4 = vadd.f32 1.0, %v1496_v18 }
 0x9fa   :  { %1497 = vrcp.f32 %v819_v4  ;;  %v832_v16 = vand.u32 2147483648, %v819_v4  ;;  %vm826_vm4 = vweird.f32 %v819_v4  ;;  %v830_v45 = vand.u32 2147483647, %v819_v4 }
 0x9fb   :  { %1499 = vpow2.f32 %v1395_v8 }
 0x9fc   :  { %v833_v51 = vor.u32 1.1754944e-38, %v832_v16  ;;  %vm831_vm6 = vcmp.eq.f32.partialorder %v830_v45, 8.507059e+37 }
 0xa00   :  { %v1498_v5 = vpop.eup %1497 }
 0xa01   :  { %v822_v7 = vmul.f32 %v1498_v5, %v819_v4  ;;  %v1500_v12 = vpop.eup %1499  ;;  %vm827_vm3 = vweird.f32 %v1498_v5 }
 0xa02   :  { %v820_v19 = vadd.f32 1.0, %v1500_v12  ;;  %vm828_vm5 = vmor %vm826_vm4, %vm827_vm3 }
 0xa03   :  { %v823_v10 = vsub.f32 1.0, %v822_v7 }
 0xa04   :  { %1501 = vrcp.f32 %v820_v19  ;;  %v847_v27 = vand.u32 2147483648, %v820_v19  ;;  %vm841_vm8 = vweird.f32 %v820_v19  ;;  %v845_v28 = vand.u32 2147483647, %v820_v19 }
 0xa05   :  { %v824_v11 = vmul.f32 %v1498_v5, %v823_v10 }
 0xa06   :  { %v848_v31 = vor.u32 1.1754944e-38, %v847_v27  ;;  %vm846_vm10 = vcmp.eq.f32.partialorder %v845_v28, 8.507059e+37 }
 0xa07   :  { %v825_v13 = vadd.f32 %v1498_v5, %v824_v11 }
 0xa09   :  { %v829_v47 = vsel %vm828_vm5, %v1498_v5, %v825_v13 }
 0xa0a   :  { %v834_v21 = vsel %vm831_vm6, %v833_v51, %v829_v47  ;;  %v1502_v23 = vpop.eup %1501 }
 0xa0b   :  { %v837_v49 = vmul.f32 %v1502_v23, %v820_v19  ;;  %vm842_vm7 = vweird.f32 %v1502_v23  ;;  %v853_v37 = vmul.f32 %v834_v21, %v1943_v46 }
 0xa0c   :  { %vm843_vm9 = vmor %vm841_vm8, %vm842_vm7 }
 0xa0d   :  { %v838_v24 = vsub.f32 1.0, %v837_v49 }
 0xa0f   :  { %v839_v25 = vmul.f32 %v1502_v23, %v838_v24 }
 0xa11   :  { %v840_v26 = vadd.f32 %v1502_v23, %v839_v25 }
 0xa13   :  { %v844_v29 = vsel %vm843_vm9, %v1502_v23, %v840_v26 }
 0xa14   :  { %v849_v34 = vsel %vm846_vm10, %v848_v31, %v844_v29 }
 0xa15   :  { %v854_v44 = vmul.f32 %v849_v34, %v1948_v55 }
 0xa35   :  { %v858_v20 = vpop.permute.xlu1 %857 }
 0xa36   :  { %v863_v22 = vmul.f32 %v858_v20, %v834_v21 }
 0xa38   :  { %867 = vrot.lane.b32.xlu0 %v863_v22, %s1669_s9 }
 0xa51   :  { %v860_v33 = vpop.permute.xlu2 %859 }
 0xa52   :  { %v864_v35 = vmul.f32 %v860_v33, %v849_v34 }
 0xa54   :  { %869 = vrot.lane.b32.xlu1 %v864_v35, %s1669_s9 }
 0xaaa   :  { %v868_v39 = vpop.permute.xlu0 %867 }
 0xaab   :  { %v1971_v40 = vadd.f32 %v868_v39, %v853_v37 }
 0xaad   :  { %1503 = vtanh.f32 %v1971_v40 }
 0xab3   :  { %v1504_v42 = vpop.eup %1503 }
 0xab4   :  { %879 = vrot.lane.b32.xlu2 %v1504_v42, %s1670_s0 }
 0xac6   :  { %v870_v50 = vpop.permute.xlu1 %869 }
 0xac7   :  { %v1976_v52 = vadd.f32 %v870_v50, %v854_v44 }
 0xac9   :  { %1505 = vtanh.f32 %v1976_v52 }
 0xacf   :  { %v1506_v53 = vpop.eup %1505 }
 0xad0   :  { %881 = vrot.lane.b32.xlu0 %v1506_v53, %s1670_s0 }
 0xb0e   :  { %v880_v36 = vpop.permute.xlu2 %879 }
 0xb0f   :  { %v885_v46 = vmul.f32 %v880_v36, %v834_v21  ;;  %v183_v36 = vadd.f32 %v1960_v62, %v1833_v30 }
 0xb11   :  { %889 = vrot.lane.b32.xlu1 %v885_v46, %s1669_s9 }
 0xb42   :  { %v882_v57 = vpop.permute.xlu0 %881 }
 0xb43   :  { %v886_v56 = vmul.f32 %v882_v57, %v849_v34 }
 0xb45   :  { %891 = vrot.lane.b32.xlu2 %v886_v56, %s1669_s9 }
 0xb83   :  { %v890_v58 = vpop.permute.xlu1 %889 }
 0xb84   :  { %1396 = vmatmul.msk.f32.vlgmr.msra.gmra.mxu2 %vm122_vm0, %v890_v58  ;;  %1398 = vmatmul.msk.f32.vlgmr.msra.gmra.mxu3 %vm122_vm0, %v890_v58 }
 0xb9f   :  { %v892_v55 = vpop.permute.xlu2 %891 }
 0xba0   :  { %1397 = vmatmul.msk.f32.gmra.mxu2 %vm122_vm0, %v892_v55  ;;  %1399 = vmatmul.msk.f32.gmra.mxu3 %vm122_vm0, %v892_v55 }
 0xc07   :  { %v914_v60 = vpop.f32.mrf.mxu2  ;;  %v936_v59 = vpop.f32.mrf.mxu3 }
 0xc08   :  { %v941_v48 = vadd.f32 %v914_v60, %v180_v43 }
 0xc0a   :  { %1507 = vtanh.f32 %v941_v48  ;;  %v1400_v2 = vmul.f32 -1.442695, %v941_v48 }
 0xc10   :  { %v1508_v54 = vpop.eup %1507 }
 0xc11   :  { %987 = vrot.lane.b32.xlu0 %v1508_v54, %s1670_s0 }
 0xc23   :  { %v917_v1 = vpop.f32.mrf.mxu2  ;;  %v938_v14 = vpop.f32.mrf.mxu3 }
 0xc24   :  { %v942_v0 = vadd.f32 %v938_v14, %v1841_v41 }
 0xc26   :  { %1509 = vtanh.f32 %v942_v0  ;;  %v1401_v9 = vmul.f32 -1.442695, %v942_v0 }
 0xc27   :  { %1511 = vpow2.f32 %v1400_v2 }
 0xc2c   :  { %v1510_v3 = vpop.eup %1509 }
 0xc2d   :  { %989 = vrot.lane.b32.xlu1 %v1510_v3, %s1670_s0  ;;  %v1512_v15 = vpop.eup %1511 }
 0xc2e   :  { %v949_v6 = vadd.f32 1.0, %v1512_v15 }
 0xc30   :  { %1513 = vrcp.f32 %v949_v6  ;;  %v962_v8 = vand.u32 2147483648, %v949_v6  ;;  %vm956_vm12 = vweird.f32 %v949_v6  ;;  %v960_v41 = vand.u32 2147483647, %v949_v6 }
 0xc31   :  { %1515 = vpow2.f32 %v1401_v9 }
 0xc32   :  { %v963_v12 = vor.u32 1.1754944e-38, %v962_v8  ;;  %vm961_vm14 = vcmp.eq.f32.partialorder %v960_v41, 8.507059e+37 }
 0xc36   :  { %v1514_v61 = vpop.eup %1513 }
 0xc37   :  { %v952_v17 = vmul.f32 %v1514_v61, %v949_v6  ;;  %v1516_v5 = vpop.eup %1515  ;;  %vm957_vm11 = vweird.f32 %v1514_v61 }
 0xc38   :  { %v950_v10 = vadd.f32 1.0, %v1516_v5  ;;  %vm958_vm13 = vmor %vm956_vm12, %vm957_vm11 }
 0xc39   :  { %v953_v18 = vsub.f32 1.0, %v952_v17 }
 0xc3a   :  { %1517 = vrcp.f32 %v950_v10  ;;  %v977_v22 = vand.u32 2147483648, %v950_v10  ;;  %vm971_vm1 = vweird.f32 %v950_v10  ;;  %v975_v23 = vand.u32 2147483647, %v950_v10 }
 0xc3b   :  { %v954_v4 = vmul.f32 %v1514_v61, %v953_v18 }
 0xc3c   :  { %v978_v24 = vor.u32 1.1754944e-38, %v977_v22  ;;  %vm976_vm3 = vcmp.eq.f32.partialorder %v975_v23, 8.507059e+37 }
 0xc3d   :  { %v955_v7 = vadd.f32 %v1514_v61, %v954_v4 }
 0xc3f   :  { %v959_v11 = vsel %vm958_vm13, %v1514_v61, %v955_v7 }
 0xc40   :  { %v964_v16 = vsel %vm961_vm14, %v963_v12, %v959_v11  ;;  %v1518_v19 = vpop.eup %1517 }
 0xc41   :  { %v967_v47 = vmul.f32 %v1518_v19, %v950_v10  ;;  %vm972_vm15 = vweird.f32 %v1518_v19  ;;  %v983_v28 = vmul.f32 %v964_v16, %v1971_v40 }
 0xc42   :  { %vm973_vm2 = vmor %vm971_vm1, %vm972_vm15 }
 0xc43   :  { %v968_v51 = vsub.f32 1.0, %v967_v47 }
 0xc45   :  { %v969_v20 = vmul.f32 %v1518_v19, %v968_v51 }
 0xc47   :  { %v970_v21 = vadd.f32 %v1518_v19, %v969_v20 }
 0xc49   :  { %v974_v49 = vsel %vm973_vm2, %v1518_v19, %v970_v21 }
 0xc4a   :  { %v979_v26 = vsel %vm976_vm3, %v978_v24, %v974_v49 }
 0xc4b   :  { %v984_v34 = vmul.f32 %v979_v26, %v1976_v52 }
 0xc83   :  { %v988_v13 = vpop.permute.xlu0 %987 }
 0xc84   :  { %v993_v45 = vmul.f32 %v988_v13, %v964_v16 }
 0xc86   :  { %997 = vrot.lane.b32.xlu2 %v993_v45, %s1669_s9 }
 0xc9f   :  { %v990_v25 = vpop.permute.xlu1 %989 }
 0xca0   :  { %v994_v27 = vmul.f32 %v990_v25, %v979_v26 }
 0xca2   :  { %999 = vrot.lane.b32.xlu0 %v994_v27, %s1669_s9 }
 0xce0   :  { %v998_v29 = vpop.permute.xlu2 %997 }
 0xce1   :  { %v1994_v31 = vadd.f32 %v998_v29, %v983_v28 }
 0xce3   :  { %1519 = vtanh.f32 %v1994_v31 }
 0xce9   :  { %v1520_v33 = vpop.eup %1519 }
 0xcea   :  { %1009 = vrot.lane.b32.xlu1 %v1520_v33, %s1670_s0 }
 0xd14   :  { %v1000_v35 = vpop.permute.xlu0 %999 }
 0xd15   :  { %v1999_v37 = vadd.f32 %v1000_v35, %v984_v34 }
 0xd17   :  { %1521 = vtanh.f32 %v1999_v37 }
 0xd1d   :  { %v1522_v39 = vpop.eup %1521 }
 0xd1e   :  { %1011 = vrot.lane.b32.xlu2 %v1522_v39, %s1670_s0 }
 0xd5c   :  { %v1010_v42 = vpop.permute.xlu1 %1009 }
 0xd5d   :  { %v1015_v40 = vmul.f32 %v1010_v42, %v964_v16 }
 0xd5f   :  { %1019 = vrot.lane.b32.xlu0 %v1015_v40, %s1669_s9 }
 0xd78   :  { %v1012_v44 = vpop.permute.xlu2 %1011 }
 0xd79   :  { %v1016_v50 = vmul.f32 %v1012_v44, %v979_v26 }
 0xd7b   :  { %1021 = vrot.lane.b32.xlu1 %v1016_v50, %s1669_s9 }
 0xdd1   :  { %v1020_v53 = vpop.permute.xlu0 %1019 }
 0xdd2   :  { %1402 = vmatmul.msk.f32.vlgmr.msra.gmra.mxu0 %vm122_vm0, %v1020_v53  ;;  %1404 = vmatmul.msk.f32.vlgmr.msra.gmra.mxu1 %vm122_vm0, %v1020_v53 }
 0xded   :  { %v1022_v52 = vpop.permute.xlu1 %1021 }
 0xdee   :  { %1403 = vmatmul.msk.f32.gmra.mxu0 %vm122_vm0, %v1022_v52  ;;  %1405 = vmatmul.msk.f32.gmra.mxu1 %vm122_vm0, %v1022_v52 }
 0xe4f   :  { %v1044_v46 = vpop.f32.mrf.mxu0  ;;  %v1066_v57 = vpop.f32.mrf.mxu1 }
 0xe50   :  { %v1071_v56 = vadd.f32 %v1044_v46, %v183_v36 }
 0xe52   :  { %1523 = vtanh.f32 %v1071_v56  ;;  %v1406_v48 = vmul.f32 -1.442695, %v1071_v56 }
 0xe58   :  { %v1524_v58 = vpop.eup %1523 }
 0xe59   :  { %1117 = vrot.lane.b32.xlu2 %v1524_v58, %s1670_s0 }
 0xe6b   :  { %v1047_v55 = vpop.f32.mrf.mxu0  ;;  %v1068_v43 = vpop.f32.mrf.mxu1 }
 0xe6c   :  { %v1072_v60 = vadd.f32 %v1068_v43, %v1838_v38 }
 0xe6e   :  { %1525 = vtanh.f32 %v1072_v60  ;;  %v1407_v4 = vmul.f32 -1.442695, %v1072_v60 }
 0xe6f   :  { %1527 = vpow2.f32 %v1406_v48 }
 0xe74   :  { %v1526_v59 = vpop.eup %1525 }
 0xe75   :  { %1119 = vrot.lane.b32.xlu0 %v1526_v59, %s1670_s0  ;;  %v1528_v54 = vpop.eup %1527 }
 0xe76   :  { %v1079_v1 = vadd.f32 1.0, %v1528_v54 }
 0xe78   :  { %1529 = vrcp.f32 %v1079_v1  ;;  %v1092_v15 = vand.u32 2147483648, %v1079_v1  ;;  %vm1086_vm5 = vweird.f32 %v1079_v1  ;;  %v1090_v6 = vand.u32 2147483647, %v1079_v1 }
 0xe79   :  { %1531 = vpow2.f32 %v1407_v4 }
 0xe7a   :  { %v1093_v61 = vor.u32 1.1754944e-38, %v1092_v15  ;;  %vm1091_vm7 = vcmp.eq.f32.partialorder %v1090_v6, 8.507059e+37 }
 0xe7e   :  { %v1530_v62 = vpop.eup %1529 }
 0xe7f   :  { %v1082_v14 = vmul.f32 %v1530_v62, %v1079_v1  ;;  %vm1087_vm4 = vweird.f32 %v1530_v62  ;;  %v1532_v5 = vpop.eup %1531 }
 0xe80   :  { %vm1088_vm6 = vmor %vm1086_vm5, %vm1087_vm4  ;;  %v1080_v7 = vadd.f32 1.0, %v1532_v5  ;;  %vm1298_vm5 = vcmask 523264  }
 0xe81   :  { %v1083_v0 = vsub.f32 1.0, %v1082_v14 }
 0xe82   :  { %1533 = vrcp.f32 %v1080_v7  ;;  %v1107_v13 = vand.u32 2147483648, %v1080_v7  ;;  %vm1101_vm9 = vweird.f32 %v1080_v7  ;;  %v1105_v16 = vand.u32 2147483647, %v1080_v7 }
 0xe83   :  { %v1084_v3 = vmul.f32 %v1530_v62, %v1083_v0 }
 0xe84   :  { %v1108_v19 = vor.u32 1.1754944e-38, %v1107_v13  ;;  %vm1106_vm11 = vcmp.eq.f32.partialorder %v1105_v16, 8.507059e+37 }
 0xe85   :  { %v1085_v2 = vadd.f32 %v1530_v62, %v1084_v3 }
 0xe87   :  { %v1089_v38 = vsel %vm1088_vm6, %v1530_v62, %v1085_v2 }
 0xe88   :  { %v1094_v9 = vsel %vm1091_vm7, %v1093_v61, %v1089_v38  ;;  %v1534_v8 = vpop.eup %1533 }
 0xe89   :  { %v1097_v41 = vmul.f32 %v1534_v8, %v1080_v7  ;;  %vm1102_vm8 = vweird.f32 %v1534_v8  ;;  %v1113_v21 = vmul.f32 %v1094_v9, %v1994_v31 }
 0xe8a   :  { %vm1103_vm10 = vmor %vm1101_vm9, %vm1102_vm8  ;;  %vm1341_vm8 = vcmask 23552  }
 0xe8b   :  { %v1098_v10 = vsub.f32 1.0, %v1097_v41 }
 0xe8d   :  { %v1099_v11 = vmul.f32 %v1534_v8, %v1098_v10 }
 0xe8f   :  { %v1100_v12 = vadd.f32 %v1534_v8, %v1099_v11 }
 0xe91   :  { %v1104_v45 = vsel %vm1103_vm10, %v1534_v8, %v1100_v12 }
 0xe92   :  { %v1109_v51 = vsel %vm1106_vm11, %v1108_v19, %v1104_v45 }
 0xe93   :  { %v1114_v24 = vmul.f32 %v1109_v51, %v1999_v37  ;;  %v186_v37 = vadd.f32 %v1962_v63, %v1833_v30 }
 0xeb3   :  { %v1118_v17 = vpop.permute.xlu2 %1117 }
 0xeb4   :  { %v1123_v18 = vmul.f32 %v1118_v17, %v1094_v9 }
 0xeb6   :  { %1127 = vrot.lane.b32.xlu1 %v1123_v18, %s1669_s9 }
 0xee7   :  { %v1120_v47 = vpop.permute.xlu0 %1119 }
 0xee8   :  { %v1124_v20 = vmul.f32 %v1120_v47, %v1109_v51 }
 0xeea   :  { %1129 = vrot.lane.b32.xlu2 %v1124_v20, %s1669_s9 }
 0xf28   :  { %v1128_v22 = vpop.permute.xlu1 %1127 }
 0xf29   :  { %v2017_v23 = vadd.f32 %v1128_v22, %v1113_v21  ;;  %v1293_v22 = vld [vmem:[%s2082_s6 + $0x38] sm:$0xff] }
 0xf2a   :  { %1310 = vmatpush.msrb.mxu0 %v1293_v22 }
 0xf2b   :  { %1535 = vtanh.f32 %v2017_v23 }
 0xf31   :  { %v1536_v49 = vpop.eup %1535 }
 0xf32   :  { %1139 = vrot.lane.b32.xlu0 %v1536_v49, %s1670_s0  ;;  %v1291_v49 = vld [vmem:[%s2082_s6 + $0x28] sm:$0xff] }
 0xf44   :  { %v1130_v25 = vpop.permute.xlu2 %1129 }
 0xf45   :  { %v2022_v26 = vadd.f32 %v1130_v25, %v1114_v24  ;;  %v1290_v24 = vld [vmem:[%s2082_s6 + $0x20] sm:$0xff]  ;;  %v1289_v25 = vld [vmem:[%s2082_s6 + $0x18] sm:$0xff] }
 0xf47   :  { %1537 = vtanh.f32 %v2022_v26 }
 0xf4d   :  { %v1538_v27 = vpop.eup %1537 }
 0xf4e   :  { %1141 = vrot.lane.b32.xlu1 %v1538_v27, %s1670_s0  ;;  %v1287_v27 = vld [vmem:[%s2082_s6 + $0x8] sm:$0xff] }
 0xfa4   :  { %v1140_v28 = vpop.permute.xlu0 %1139 }
 0xfa5   :  { %v1145_v29 = vmul.f32 %v1140_v28, %v1094_v9  ;;  %v1286_v28 = vld [vmem:[%s2082_s6] sm:$0xff] }
 0xfa7   :  { %1149 = vrot.lane.b32.xlu2 %v1145_v29, %s1669_s9 }
 0xfc0   :  { %v1142_v31 = vpop.permute.xlu1 %1141 }
 0xfc1   :  { %v1146_v33 = vmul.f32 %v1142_v31, %v1109_v51 }
 0xfc3   :  { %1151 = vrot.lane.b32.xlu0 %v1146_v33, %s1669_s9 }
0x1001   :  { %v1150_v34 = vpop.permute.xlu2 %1149 }
0x1002   :  { %1408 = vmatmul.msk.f32.vlgmr.msrb.gmra.mxu2 %vm122_vm0, %v1150_v34  ;;  %1410 = vmatmul.msk.f32.vlgmr.msrb.gmra.mxu3 %vm122_vm0, %v1150_v34  ;;  %v1426_v34 = vld [vmem:[%s2083_s7] ss:$0 sm:$0xff] }
0x1035   :  { %v1152_v35 = vpop.permute.xlu0 %1151 }
0x1036   :  { %1409 = vmatmul.msk.f32.gmra.mxu2 %vm122_vm0, %v1152_v35  ;;  %1411 = vmatmul.msk.f32.gmra.mxu3 %vm122_vm0, %v1152_v35 }
0x1085   :  { %v1174_v39 = vpop.f32.mrf.mxu2  ;;  %v1196_v42 = vpop.f32.mrf.mxu3 }
0x1086   :  { %v1201_v40 = vadd.f32 %v1174_v39, %v186_v37 }
0x1088   :  { %1539 = vtanh.f32 %v1201_v40  ;;  %v1412_v46 = vmul.f32 -1.442695, %v1201_v40 }
0x108e   :  { %v1540_v44 = vpop.eup %1539 }
0x108f   :  { %1247 = vrot.lane.b32.xlu1 %v1540_v44, %s1670_s0 }
0x10b9   :  { %v1177_v50 = vpop.f32.mrf.mxu2  ;;  %v1198_v53 = vpop.f32.mrf.mxu3 }
0x10ba   :  { %v1202_v52 = vadd.f32 %v1198_v53, %v1835_v32 }
0x10bc   :  { %1541 = vtanh.f32 %v1202_v52  ;;  %v1413_v58 = vmul.f32 -1.442695, %v1202_v52 }
0x10bd   :  { %1543 = vpow2.f32 %v1412_v46 }
0x10c2   :  { %v1542_v36 = vpop.eup %1541 }
0x10c3   :  { %1249 = vrot.lane.b32.xlu2 %v1542_v36, %s1670_s0  ;;  %v1544_v57 = vpop.eup %1543 }
0x10c4   :  { %v1209_v56 = vadd.f32 1.0, %v1544_v57 }
0x10c6   :  { %1545 = vrcp.f32 %v1209_v56  ;;  %v1222_v48 = vand.u32 2147483648, %v1209_v56  ;;  %vm1216_vm13 = vweird.f32 %v1209_v56  ;;  %v1220_v32 = vand.u32 2147483647, %v1209_v56 }
0x10c7   :  { %1547 = vpow2.f32 %v1413_v58 }
0x10c8   :  { %v1223_v62 = vor.u32 1.1754944e-38, %v1222_v48  ;;  %vm1221_vm15 = vcmp.eq.f32.partialorder %v1220_v32, 8.507059e+37 }
0x10cc   :  { %v1546_v30 = vpop.eup %1545 }
0x10cd   :  { %v1212_v63 = vmul.f32 %v1546_v30, %v1209_v56  ;;  %v1548_v60 = vpop.eup %1547  ;;  %vm1217_vm12 = vweird.f32 %v1546_v30 }
0x10ce   :  { %v1210_v54 = vadd.f32 1.0, %v1548_v60  ;;  %vm1218_vm14 = vmor %vm1216_vm13, %vm1217_vm12 }
0x10cf   :  { %v1213_v55 = vsub.f32 1.0, %v1212_v63 }
0x10d0   :  { %1549 = vrcp.f32 %v1210_v54  ;;  %v1237_v17 = vand.u32 2147483648, %v1210_v54  ;;  %vm1231_vm2 = vweird.f32 %v1210_v54  ;;  %v1235_v9 = vand.u32 2147483647, %v1210_v54 }
0x10d1   :  { %v1214_v43 = vmul.f32 %v1546_v30, %v1213_v55 }
0x10d2   :  { %v1238_v4 = vor.u32 1.1754944e-38, %v1237_v17  ;;  %vm1236_vm4 = vcmp.eq.f32.partialorder %v1235_v9, 8.507059e+37 }
0x10d3   :  { %v1215_v59 = vadd.f32 %v1546_v30, %v1214_v43 }
0x10d5   :  { %v1219_v1 = vsel %vm1218_vm14, %v1546_v30, %v1215_v59 }
0x10d6   :  { %v1224_v0 = vsel %vm1221_vm15, %v1223_v62, %v1219_v1  ;;  %v1550_v2 = vpop.eup %1549 }
0x10d7   :  { %v1227_v15 = vmul.f32 %v1550_v2, %v1210_v54  ;;  %vm1232_vm1 = vweird.f32 %v1550_v2  ;;  %v1243_v41 = vmul.f32 %v1224_v0, %v2017_v23  ;;  %v1292_v23 = vld [vmem:[%s2082_s6 + $0x30] sm:$0xff] }
0x10d8   :  { %vm1233_vm3 = vmor %vm1231_vm2, %vm1232_vm1  ;;  %1311 = vmatpush.msrb.mxu0 %v1292_v23 }
0x10d9   :  { %v1228_v6 = vsub.f32 1.0, %v1227_v15 }
0x10da   :  { %1312 = vmatpush.msrb.mxu0 %v1291_v49 }
0x10db   :  { %v1229_v38 = vmul.f32 %v1550_v2, %v1228_v6 }
0x10dc   :  { %1313 = vmatpush.msrb.mxu0 %v1290_v24 }
0x10dd   :  { %v1230_v61 = vadd.f32 %v1550_v2, %v1229_v38 }
0x10de   :  { %1314 = vmatpush.msrb.mxu0 %v1289_v25 }
0x10df   :  { %v1234_v18 = vsel %vm1233_vm3, %v1550_v2, %v1230_v61 }
0x10e0   :  { %v1239_v7 = vsel %vm1236_vm4, %v1238_v4, %v1234_v18 }
0x10e1   :  { %v1244_v13 = vmul.f32 %v1239_v7, %v2022_v26  ;;  %v1288_v26 = vld [vmem:[%s2082_s6 + $0x10] sm:$0xff] }
0x10e2   :  { %1315 = vmatpush.msrb.mxu0 %v1288_v26 }
0x10e4   :  { %1316 = vmatpush.msrb.mxu0 %v1287_v27 }
0x10e6   :  { %1317 = vmatpush.msrb.mxu0 %v1286_v28 }
0x1101   :  { %v1248_v14 = vpop.permute.xlu1 %1247 }
0x1102   :  { %v1253_v3 = vmul.f32 %v1248_v14, %v1224_v0 }
0x1104   :  { %1257 = vrot.lane.b32.xlu0 %v1253_v3, %s1669_s9 }
0x111d   :  { %v1250_v5 = vpop.permute.xlu2 %1249 }
0x111e   :  { %v1254_v8 = vmul.f32 %v1250_v5, %v1239_v7 }
0x1120   :  { %1259 = vrot.lane.b32.xlu1 %v1254_v8, %s1669_s9 }
0x1176   :  { %v1258_v10 = vpop.permute.xlu0 %1257 }
0x1177   :  { %v1263_v11 = vadd.f32 %v1258_v10, %v1243_v41 }
0x1179   :  { %1551 = vtanh.f32 %v1263_v11 }
0x117f   :  { %v1552_v12 = vpop.eup %1551 }
0x1180   :  { %1269 = vrot.lane.b32.xlu2 %v1552_v12, %s1670_s0 }
0x1192   :  { %v1260_v16 = vpop.permute.xlu1 %1259 }
0x1193   :  { %v1264_v45 = vadd.f32 %v1260_v16, %v1244_v13 }
0x1195   :  { %1553 = vtanh.f32 %v1264_v45 }
0x119b   :  { %v1554_v19 = vpop.eup %1553 }
0x119c   :  { %1271 = vrot.lane.b32.xlu0 %v1554_v19, %s1670_s0 }
0x11da   :  { %v1270_v47 = vpop.permute.xlu2 %1269 }
0x11db   :  { %v1275_v51 = vmul.f32 %v1270_v47, %v1224_v0 }
0x11dd   :  { %1278 = vrot.lane.b32.xlu1 %v1275_v51, %s1669_s9 }
0x120e   :  { %v1272_v20 = vpop.permute.xlu0 %1271 }
0x120f   :  { %v1276_v21 = vmul.f32 %v1272_v20, %v1239_v7 }
0x1211   :  { %1282 = vrot.lane.b32.xlu2 %v1276_v21, %s1670_s0 }
0x124f   :  { %v1279_v29 = vpop.permute.xlu1 %1278 }
0x126b   :  { %v1283_v31 = vpop.permute.xlu2 %1282 }
0x126c   :  { %v1285_v33 = vsel %vm122_vm0, %v1279_v29, %v1283_v31 }
0x126d   :  { %1414 = vmatmul.msk.f32.vlgmr.msrb.gmra.mxu0 %vm1298_vm5, %v1285_v33 }
0x12ea   :  { %v1319_v35 = vpop.f32.mrf.mxu0 }
0x12eb   :  { %v1320_v37 = vadd.f32 %v1426_v34, %v1319_v35 }
0x12ed   :  { %v1415_v39 = vmul.f32 -1.442695, %v1320_v37 }
0x12ef   :  { %1555 = vpow2.f32 %v1415_v39 }
0x12f5   :  { %v1556_v42 = vpop.eup %1555 }
0x12f6   :  { %v1325_v40 = vadd.f32 1.0, %v1556_v42 }
0x12f8   :  { %1557 = vrcp.f32 %v1325_v40  ;;  %v1337_v52 = vand.u32 2147483648, %v1325_v40  ;;  %v1335_v46 = vand.u32 2147483647, %v1325_v40  ;;  %vm1331_vm0 = vweird.f32 %v1325_v40 }
0x12fa   :  { %v1338_v56 = vor.u32 1.1754944e-38, %v1337_v52  ;;  %vm1336_vm9 = vcmp.eq.f32.partialorder %v1335_v46, 8.507059e+37 }
0x12fe   :  { %v1558_v44 = vpop.eup %1557 }
0x12ff   :  { %v1327_v50 = vmul.f32 %v1558_v44, %v1325_v40  ;;  %vm1332_vm6 = vweird.f32 %v1558_v44 }
0x1300   :  { %vm1333_vm7 = vmor %vm1331_vm0, %vm1332_vm6 }
0x1301   :  { %v1328_v53 = vsub.f32 1.0, %v1327_v50 }
0x1303   :  { %v1329_v36 = vmul.f32 %v1558_v44, %v1328_v53 }
0x1305   :  { %v1330_v57 = vadd.f32 %v1558_v44, %v1329_v36 }
0x1307   :  { %v1334_v30 = vsel %vm1333_vm7, %v1558_v44, %v1330_v57 }
0x1308   :  { %v1339_v63 = vsel %vm1336_vm9, %v1338_v56, %v1334_v30 }
0x1309   :  { %1342 = vst.msk [vmem:[%s2084_s8] sm:$0xff] %vm1341_vm8, %v1339_v63 }
0x130a   :  { %1347 = vsyncpa [#allocation3], 1 }
0x130b   :  { %1348 = vsyncpa [#allocation5], 1 }
0x130c   :  { %1349 = vsyncpa [#allocation8], 1 }

</bundles_post_ra>
